<compile_context>
chip_gen: v5e
topology: v5e:2x2
jax: 0.10.0
libtpu: 0.0.40
codegen_flags: <defaults>
</compile_context>

<pallas_src>
import numpy as np
import jax
import jax.numpy as jnp
from jax import lax
from jax.experimental import pallas as pl
from jax.experimental.pallas import tpu as pltpu

MASK_TOKEN_ID = 50264   # roberta-base <mask> token id
MAX_PRED = 20
SEQ_LEN = 64
BATCH = 4


def _mlm_mask_kernel(ids_ref, pos_ref, out_ref):
    ids = ids_ref[...]            # [R, L2] int32  (two 64-token rows per 128 lanes)
    pos = pos_ref[...]            # [R, P2] int32, -1 sentinel past n_pred
    R, L2 = ids.shape
    P2 = pos.shape[1]
    P, L = P2 // 2, L2 // 2
    W = out_ref.shape[1]          # packed output width (multiple of 128)

    lane = lax.broadcasted_iota(jnp.int32, (R, L2), 1)    # 0..127
    col = lax.broadcasted_iota(jnp.int32, (R, P2), 1)     # 0..P2-1

    # Effective target lane of each prediction slot: slots belonging to the
    # second packed sequence (col >= P) are shifted by +L into the upper lane
    # half.  Invalid (sentinel -1) slots are kept at -1 so they never match.
    pos_eff = jnp.where(
        pos >= 0, pos + jnp.where(col >= P, jnp.int32(L), jnp.int32(0)),
        jnp.int32(-1))

    hit_any = jnp.zeros((R, L2), jnp.bool_)
    tokens = jnp.zeros((R, P2), jnp.int32)

    # Static unrolled 2-D loop over prediction slots: no 3-D temporary, no
    # sublane padding of P, no relayouts; duplicate positions gather the
    # original token correctly (each slot is independent).
    for j in range(P2):
        hit_j = lane == pos_eff[:, j:j + 1]                          # [R, L2]
        hit_any = jnp.logical_or(hit_any, hit_j)
        tok_j = jnp.sum(jnp.where(hit_j, ids, 0), axis=1, keepdims=True)  # [R, 1]
        tokens = jnp.where(col == j, tok_j, tokens)                  # place col j

    # scatter: write <mask> at every masked position
    masked_ids = jnp.where(hit_any, jnp.int32(MASK_TOKEN_ID), ids)   # [R, L2]
    # positions, zero-padded past n_pred (matches the PyTorch reference)
    pos_out = jnp.where(pos >= 0, pos, jnp.int32(0))                 # [R, P2]

    pieces = [masked_ids, tokens, pos_out]
    pad = W - (L2 + 2 * P2)
    if pad > 0:
        pieces.append(jnp.zeros((R, pad), jnp.int32))
    # Single lane-dense, unmasked store of the packed slab.
    out_ref[...] = jnp.concatenate(pieces, axis=1)


def mlm_mask_packed(ids, pos, *, row_block=256):
    """ids [N,L] int32, pos [N,P] int32 (-1 = pad) -> packed [ceil(N/2), W] int32.

    Packed row layout (pair of sequences 2r, 2r+1):
      lanes [0, 2L)        masked ids   (lane-packed)
      lanes [2L, 2L+2P)    gathered mlm tokens
      lanes [2L+2P, +2P)   mlm positions (original 0..L-1 coordinates)
    Fused downstream consumers should read this slab directly instead of the
    split views returned by `mlm_mask` (avoids extra HBM passes)."""
    ids = jnp.asarray(ids, jnp.int32)
    pos = jnp.asarray(pos, jnp.int32)
    N, L = ids.shape
    P = pos.shape[1]

    # Pad to an even number of sequences so two rows lane-pack per vreg row.
    if N % 2:
        ids = jnp.pad(ids, ((0, 1), (0, 0)))
        pos = jnp.pad(pos, ((0, 1), (0, 0)), constant_values=-1)
    R = ids.shape[0] // 2
    L2, P2 = 2 * L, 2 * P
    ids2 = ids.reshape(R, L2)
    pos2 = pos.reshape(R, P2)
    W = pl.cdiv(L2 + 2 * P2, 128) * 128          # lane-dense packed width

    # Row block: multiple of 8 sublanes; make the grid >= 2 steps whenever
    # possible so "parallel" can shard rows across v7x's two TensorCores.
    if R <= 8:
        rb, Rp = R, R
    else:
        half8 = pl.cdiv(pl.cdiv(R, 2), 8) * 8
        rb = min(row_block, half8)
        Rp = pl.cdiv(R, rb) * rb
        if Rp != R:
            ids2 = jnp.pad(ids2, ((0, Rp - R), (0, 0)))
            pos2 = jnp.pad(pos2, ((0, Rp - R), (0, 0)), constant_values=-1)
    grid = (Rp // rb,)

    packed = pl.pallas_call(
        _mlm_mask_kernel,
        out_shape=jax.ShapeDtypeStruct((Rp, W), jnp.int32),
        grid=grid,
        in_specs=[
            pl.BlockSpec((rb, L2), lambda i: (i, 0)),
            pl.BlockSpec((rb, P2), lambda i: (i, 0)),
        ],
        out_specs=pl.BlockSpec((rb, W), lambda i: (i, 0)),
        compiler_params=pltpu.CompilerParams(
            dimension_semantics=("parallel",)),
    )(ids2, pos2)

    return packed[:R] if Rp != R else packed


def mlm_mask(ids, pos, *, row_block=256):
    """Split view matching the PyTorch module's return signature:
       (masked_ids [N,L], mlm_tokens [N,P], mlm_pos [N,P])."""
    N, L = ids.shape
    P = pos.shape[1]
    L2, P2 = 2 * L, 2 * P
    packed = mlm_mask_packed(ids, pos, row_block=row_block)
    masked_ids = packed[:, :L2].reshape(-1, L)[:N]
    mlm_tokens = packed[:, L2:L2 + P2].reshape(-1, P)[:N]
    mlm_pos = packed[:, L2 + P2:L2 + 2 * P2].reshape(-1, P)[:N]
    return masked_ids, mlm_tokens, mlm_pos


def prompt_mlm_forward(turn_lens, token_table, shuffle_key):
    """Host glue reproducing the forward-pass semantics of prompt_MLM.forward
    on deterministically simulated tokenizer output, then calling the Pallas
    kernel for the masking hot path."""
    # TODO(synk): RobertaTokenizer string tokenization has no Pallas/JAX
    # equivalent; token ids are synthesized deterministically here.
    DOT, BOS, EOS, PAD = 4, 0, 2, 1

    ids = np.full((BATCH, SEQ_LEN), PAD, dtype=np.int32)
    masks = np.zeros((BATCH, SEQ_LEN), dtype=np.int32)
    pos = np.full((BATCH, MAX_PRED), -1, dtype=np.int32)   # -1 sentinel
    npred = np.zeros((BATCH,), dtype=np.int32)

    for b in range(BATCH):
        n_tok = int(turn_lens[b])
        # [<s>, turn tokens..., '.', prompt token, '.', </s>, <pad>...]
        row = [BOS] + list(int(t) for t in token_table[b, :n_tok]) \
              + [DOT, int(token_table[b, n_tok]), DOT, EOS]
        row = row[:SEQ_LEN]
        ids[b, :len(row)] = row
        masks[b, :len(row)] = 1

        # truncate at first '.' and collect candidate maskable positions
        first_dot = row.index(DOT)
        cand = [i for i in range(first_dot) if row[i] not in (BOS, PAD, EOS)]
        perm = np.asarray(
            jax.random.permutation(jax.random.fold_in(shuffle_key, b), len(cand)))
        cand = [cand[p] for p in perm]

        n_pred = min(MAX_PRED, max(1, int(round(n_tok * 0.15))))
        n_pred = min(n_pred, len(cand))
        npred[b] = n_pred
        pos[b, :n_pred] = cand[:n_pred]

    masked_ids, mlm_tokens, mlm_pos = mlm_mask(
        jnp.asarray(ids), jnp.asarray(pos))
    return masked_ids, jnp.asarray(masks), mlm_tokens, mlm_pos, ids, pos, npred


if __name__ == "__main__":
    key = jax.random.PRNGKey(0)
    k_len, k_tok, k_shuf, k_big_ids, k_big_pos = jax.random.split(key, 5)

    # simulated per-turn token counts and token ids (ids avoid 0/1/2/4 specials)
    turn_lens = np.asarray(jax.random.randint(k_len, (BATCH,), 10, 30))
    token_table = np.asarray(jax.random.randint(k_tok, (BATCH, SEQ_LEN), 5, 1000))

    out = prompt_mlm_forward(turn_lens, token_table, k_shuf)
    jax.block_until_ready(out[:4])
    ids_out, masks_out, mlm_tokens_out, mlm_pos_out, ids_in, pos_in, npred = out

    assert ids_out.shape == (BATCH, SEQ_LEN)
    assert masks_out.shape == (BATCH, SEQ_LEN)
    assert mlm_tokens_out.shape == (BATCH, MAX_PRED)
    assert mlm_pos_out.shape == (BATCH, MAX_PRED)

    # correctness check against the reference gather/scatter semantics
    ids_np = np.asarray(ids_out)
    tok_np = np.asarray(mlm_tokens_out)
    pos_np = np.asarray(mlm_pos_out)
    for b in range(BATCH):
        n = int(npred[b])
        for j in range(MAX_PRED):
            if j < n:
                p = int(pos_in[b, j])
                assert pos_np[b, j] == p
                assert tok_np[b, j] == ids_in[b, p]
                assert ids_np[b, p] == MASK_TOKEN_ID
            else:
                assert pos_np[b, j] == 0 and tok_np[b, j] == 0
    # unmasked positions unchanged
    masked_set = [set(int(p) for p in pos_in[b, :int(npred[b])]) for b in range(BATCH)]
    for b in range(BATCH):
        for l in range(SEQ_LEN):
            if l not in masked_set[b]:
                assert ids_np[b, l] == ids_in[b, l]

    # exercise the batched multi-block (parallel, >=2 grid steps) path with a
    # larger synthetic row count and verify against a numpy reference
    # (random positions may contain duplicates / -1 sentinels).
    NBIG = 512
    big_ids = jax.random.randint(k_big_ids, (NBIG, SEQ_LEN), 5, 1000, dtype=jnp.int32)
    big_pos = jax.random.randint(k_big_pos, (NBIG, MAX_PRED), -1, SEQ_LEN, dtype=jnp.int32)
    b_ids, b_tok, b_pos = mlm_mask(big_ids, big_pos, row_block=256)
    jax.block_until_ready((b_ids, b_tok, b_pos))
    assert b_ids.shape == (NBIG, SEQ_LEN)
    assert b_tok.shape == (NBIG, MAX_PRED)
    assert b_pos.shape == (NBIG, MAX_PRED)

    src = np.asarray(big_ids)
    ppos = np.asarray(big_pos)
    ref_ids = src.copy()
    ref_tok = np.zeros((NBIG, MAX_PRED), np.int32)
    ref_pos = np.zeros((NBIG, MAX_PRED), np.int32)
    for r in range(NBIG):
        for j in range(MAX_PRED):
            p = int(ppos[r, j])
            if p >= 0:
                ref_tok[r, j] = src[r, p]      # gather from original ids
                ref_pos[r, j] = p
                ref_ids[r, p] = MASK_TOKEN_ID
    assert np.array_equal(np.asarray(b_ids), ref_ids)
    assert np.array_equal(np.asarray(b_tok), ref_tok)
    assert np.array_equal(np.asarray(b_pos), ref_pos)

    print("KERNEL_OK")
</pallas_src>

<mosaic_0001>
module attributes {stable_mosaic.version = 11 : i64} {
  func.func @_mlm_mask_kernel(%arg0: i32, %arg1: memref<2x128xi32, #tpu.memory_space<vmem>>, %arg2: memref<2x40xi32, #tpu.memory_space<vmem>>, %arg3: memref<2x256xi32, #tpu.memory_space<vmem>>) attributes {dimension_semantics = [#tpu.dimension_semantics<parallel>], iteration_bounds = array<i64: 1>, scalar_prefetch = 0 : i64, scratch_operands = 0 : i64, tpu.core_type = #tpu.core_type<tc>, window_params = [{transform_indices = @transform_0, window_bounds = array<i64: 2, 128>}, {transform_indices = @transform_1, window_bounds = array<i64: 2, 40>}, {transform_indices = @transform_2, window_bounds = array<i64: 2, 256>}]} {
    %c0 = arith.constant 0 : index
    %c0_0 = arith.constant 0 : index
    %0 = vector.load %arg1[%c0, %c0_0] : memref<2x128xi32, #tpu.memory_space<vmem>>, vector<2x128xi32>
    %c0_1 = arith.constant 0 : index
    %c0_2 = arith.constant 0 : index
    %1 = vector.load %arg2[%c0_1, %c0_2] : memref<2x40xi32, #tpu.memory_space<vmem>>, vector<2x40xi32>
    %2 = tpu.iota {dimensions = array<i32: 1>} : vector<2x128xi32>
    %3 = tpu.iota {dimensions = array<i32: 1>} : vector<2x40xi32>
    %c0_i32 = arith.constant 0 : i32
    %4 = vector.broadcast %c0_i32 : i32 to vector<2x40xi32>
    %5 = arith.cmpi sge, %1, %4 : vector<2x40xi32>
    %c20_i32 = arith.constant 20 : i32
    %6 = vector.broadcast %c20_i32 : i32 to vector<2x40xi32>
    %7 = arith.cmpi sge, %3, %6 : vector<2x40xi32>
    %c64_i32 = arith.constant 64 : i32
    %c0_i32_3 = arith.constant 0 : i32
    %8 = vector.broadcast %c64_i32 : i32 to vector<2x40xi32>
    %9 = vector.broadcast %c0_i32_3 : i32 to vector<2x40xi32>
    %10 = arith.select %7, %8, %9 : vector<2x40xi1>, vector<2x40xi32>
    %11 = arith.addi %1, %10 : vector<2x40xi32>
    %c-1_i32 = arith.constant -1 : i32
    %12 = vector.broadcast %c-1_i32 : i32 to vector<2x40xi32>
    %13 = arith.select %5, %11, %12 : vector<2x40xi1>, vector<2x40xi32>
    %false = arith.constant false
    %14 = vector.broadcast %false : i1 to vector<2x128xi1>
    %c0_i32_4 = arith.constant 0 : i32
    %15 = vector.broadcast %c0_i32_4 : i32 to vector<2x40xi32>
    %16 = vector.extract_strided_slice %13 {offsets = [0, 0], sizes = [2, 1], strides = [1, 1]} : vector<2x40xi32> to vector<2x1xi32>
    %17 = vector.broadcast %16 : vector<2x1xi32> to vector<2x128xi32>
    %18 = arith.cmpi eq, %2, %17 : vector<2x128xi32>
    %19 = arith.ori %14, %18 : vector<2x128xi1>
    %c0_i32_5 = arith.constant 0 : i32
    %20 = vector.broadcast %c0_i32_5 : i32 to vector<2x128xi32>
    %21 = arith.select %18, %0, %20 : vector<2x128xi1>, vector<2x128xi32>
    %cst = arith.constant dense<0> : vector<2xi32>
    %22 = vector.multi_reduction <add>, %21, %cst [1] : vector<2x128xi32> to vector<2xi32>
    %23 = vector.shape_cast %22 : vector<2xi32> to vector<2x1xi32>
    %c0_i32_6 = arith.constant 0 : i32
    %24 = vector.broadcast %c0_i32_6 : i32 to vector<2x40xi32>
    %25 = arith.cmpi eq, %3, %24 : vector<2x40xi32>
    %26 = vector.shape_cast %23 : vector<2x1xi32> to vector<2x1xi32>
    %27 = vector.broadcast %26 : vector<2x1xi32> to vector<2x40xi32>
    %28 = arith.select %25, %27, %15 : vector<2x40xi1>, vector<2x40xi32>
    %29 = vector.extract_strided_slice %13 {offsets = [0, 1], sizes = [2, 1], strides = [1, 1]} : vector<2x40xi32> to vector<2x1xi32>
    %30 = vector.broadcast %29 : vector<2x1xi32> to vector<2x128xi32>
    %31 = arith.cmpi eq, %2, %30 : vector<2x128xi32>
    %32 = arith.ori %19, %31 : vector<2x128xi1>
    %c0_i32_7 = arith.constant 0 : i32
    %33 = vector.broadcast %c0_i32_7 : i32 to vector<2x128xi32>
    %34 = arith.select %31, %0, %33 : vector<2x128xi1>, vector<2x128xi32>
    %cst_8 = arith.constant dense<0> : vector<2xi32>
    %35 = vector.multi_reduction <add>, %34, %cst_8 [1] : vector<2x128xi32> to vector<2xi32>
    %36 = vector.shape_cast %35 : vector<2xi32> to vector<2x1xi32>
    %c1_i32 = arith.constant 1 : i32
    %37 = vector.broadcast %c1_i32 : i32 to vector<2x40xi32>
    %38 = arith.cmpi eq, %3, %37 : vector<2x40xi32>
    %39 = vector.shape_cast %36 : vector<2x1xi32> to vector<2x1xi32>
    %40 = vector.broadcast %39 : vector<2x1xi32> to vector<2x40xi32>
    %41 = arith.select %38, %40, %28 : vector<2x40xi1>, vector<2x40xi32>
    %42 = vector.extract_strided_slice %13 {offsets = [0, 2], sizes = [2, 1], strides = [1, 1]} : vector<2x40xi32> to vector<2x1xi32>
    %43 = vector.broadcast %42 : vector<2x1xi32> to vector<2x128xi32>
    %44 = arith.cmpi eq, %2, %43 : vector<2x128xi32>
    %45 = arith.ori %32, %44 : vector<2x128xi1>
    %c0_i32_9 = arith.constant 0 : i32
    %46 = vector.broadcast %c0_i32_9 : i32 to vector<2x128xi32>
    %47 = arith.select %44, %0, %46 : vector<2x128xi1>, vector<2x128xi32>
    %cst_10 = arith.constant dense<0> : vector<2xi32>
    %48 = vector.multi_reduction <add>, %47, %cst_10 [1] : vector<2x128xi32> to vector<2xi32>
    %49 = vector.shape_cast %48 : vector<2xi32> to vector<2x1xi32>
    %c2_i32 = arith.constant 2 : i32
    %50 = vector.broadcast %c2_i32 : i32 to vector<2x40xi32>
    %51 = arith.cmpi eq, %3, %50 : vector<2x40xi32>
    %52 = vector.shape_cast %49 : vector<2x1xi32> to vector<2x1xi32>
    %53 = vector.broadcast %52 : vector<2x1xi32> to vector<2x40xi32>
    %54 = arith.select %51, %53, %41 : vector<2x40xi1>, vector<2x40xi32>
    %55 = vector.extract_strided_slice %13 {offsets = [0, 3], sizes = [2, 1], strides = [1, 1]} : vector<2x40xi32> to vector<2x1xi32>
    %56 = vector.broadcast %55 : vector<2x1xi32> to vector<2x128xi32>
    %57 = arith.cmpi eq, %2, %56 : vector<2x128xi32>
    %58 = arith.ori %45, %57 : vector<2x128xi1>
    %c0_i32_11 = arith.constant 0 : i32
    %59 = vector.broadcast %c0_i32_11 : i32 to vector<2x128xi32>
    %60 = arith.select %57, %0, %59 : vector<2x128xi1>, vector<2x128xi32>
    %cst_12 = arith.constant dense<0> : vector<2xi32>
    %61 = vector.multi_reduction <add>, %60, %cst_12 [1] : vector<2x128xi32> to vector<2xi32>
    %62 = vector.shape_cast %61 : vector<2xi32> to vector<2x1xi32>
    %c3_i32 = arith.constant 3 : i32
    %63 = vector.broadcast %c3_i32 : i32 to vector<2x40xi32>
    %64 = arith.cmpi eq, %3, %63 : vector<2x40xi32>
    %65 = vector.shape_cast %62 : vector<2x1xi32> to vector<2x1xi32>
    %66 = vector.broadcast %65 : vector<2x1xi32> to vector<2x40xi32>
    %67 = arith.select %64, %66, %54 : vector<2x40xi1>, vector<2x40xi32>
    %68 = vector.extract_strided_slice %13 {offsets = [0, 4], sizes = [2, 1], strides = [1, 1]} : vector<2x40xi32> to vector<2x1xi32>
    %69 = vector.broadcast %68 : vector<2x1xi32> to vector<2x128xi32>
    %70 = arith.cmpi eq, %2, %69 : vector<2x128xi32>
    %71 = arith.ori %58, %70 : vector<2x128xi1>
    %c0_i32_13 = arith.constant 0 : i32
    %72 = vector.broadcast %c0_i32_13 : i32 to vector<2x128xi32>
    %73 = arith.select %70, %0, %72 : vector<2x128xi1>, vector<2x128xi32>
    %cst_14 = arith.constant dense<0> : vector<2xi32>
    %74 = vector.multi_reduction <add>, %73, %cst_14 [1] : vector<2x128xi32> to vector<2xi32>
    %75 = vector.shape_cast %74 : vector<2xi32> to vector<2x1xi32>
    %c4_i32 = arith.constant 4 : i32
    %76 = vector.broadcast %c4_i32 : i32 to vector<2x40xi32>
    %77 = arith.cmpi eq, %3, %76 : vector<2x40xi32>
    %78 = vector.shape_cast %75 : vector<2x1xi32> to vector<2x1xi32>
    %79 = vector.broadcast %78 : vector<2x1xi32> to vector<2x40xi32>
    %80 = arith.select %77, %79, %67 : vector<2x40xi1>, vector<2x40xi32>
    %81 = vector.extract_strided_slice %13 {offsets = [0, 5], sizes = [2, 1], strides = [1, 1]} : vector<2x40xi32> to vector<2x1xi32>
    %82 = vector.broadcast %81 : vector<2x1xi32> to vector<2x128xi32>
    %83 = arith.cmpi eq, %2, %82 : vector<2x128xi32>
    %84 = arith.ori %71, %83 : vector<2x128xi1>
    %c0_i32_15 = arith.constant 0 : i32
    %85 = vector.broadcast %c0_i32_15 : i32 to vector<2x128xi32>
    %86 = arith.select %83, %0, %85 : vector<2x128xi1>, vector<2x128xi32>
    %cst_16 = arith.constant dense<0> : vector<2xi32>
    %87 = vector.multi_reduction <add>, %86, %cst_16 [1] : vector<2x128xi32> to vector<2xi32>
    %88 = vector.shape_cast %87 : vector<2xi32> to vector<2x1xi32>
    %c5_i32 = arith.constant 5 : i32
    %89 = vector.broadcast %c5_i32 : i32 to vector<2x40xi32>
    %90 = arith.cmpi eq, %3, %89 : vector<2x40xi32>
    %91 = vector.shape_cast %88 : vector<2x1xi32> to vector<2x1xi32>
    %92 = vector.broadcast %91 : vector<2x1xi32> to vector<2x40xi32>
    %93 = arith.select %90, %92, %80 : vector<2x40xi1>, vector<2x40xi32>
    %94 = vector.extract_strided_slice %13 {offsets = [0, 6], sizes = [2, 1], strides = [1, 1]} : vector<2x40xi32> to vector<2x1xi32>
    %95 = vector.broadcast %94 : vector<2x1xi32> to vector<2x128xi32>
    %96 = arith.cmpi eq, %2, %95 : vector<2x128xi32>
    %97 = arith.ori %84, %96 : vector<2x128xi1>
    %c0_i32_17 = arith.constant 0 : i32
    %98 = vector.broadcast %c0_i32_17 : i32 to vector<2x128xi32>
    %99 = arith.select %96, %0, %98 : vector<2x128xi1>, vector<2x128xi32>
    %cst_18 = arith.constant dense<0> : vector<2xi32>
    %100 = vector.multi_reduction <add>, %99, %cst_18 [1] : vector<2x128xi32> to vector<2xi32>
    %101 = vector.shape_cast %100 : vector<2xi32> to vector<2x1xi32>
    %c6_i32 = arith.constant 6 : i32
    %102 = vector.broadcast %c6_i32 : i32 to vector<2x40xi32>
    %103 = arith.cmpi eq, %3, %102 : vector<2x40xi32>
    %104 = vector.shape_cast %101 : vector<2x1xi32> to vector<2x1xi32>
    %105 = vector.broadcast %104 : vector<2x1xi32> to vector<2x40xi32>
    %106 = arith.select %103, %105, %93 : vector<2x40xi1>, vector<2x40xi32>
    %107 = vector.extract_strided_slice %13 {offsets = [0, 7], sizes = [2, 1], strides = [1, 1]} : vector<2x40xi32> to vector<2x1xi32>
    %108 = vector.broadcast %107 : vector<2x1xi32> to vector<2x128xi32>
    %109 = arith.cmpi eq, %2, %108 : vector<2x128xi32>
    %110 = arith.ori %97, %109 : vector<2x128xi1>
    %c0_i32_19 = arith.constant 0 : i32
    %111 = vector.broadcast %c0_i32_19 : i32 to vector<2x128xi32>
    %112 = arith.select %109, %0, %111 : vector<2x128xi1>, vector<2x128xi32>
    %cst_20 = arith.constant dense<0> : vector<2xi32>
    %113 = vector.multi_reduction <add>, %112, %cst_20 [1] : vector<2x128xi32> to vector<2xi32>
    %114 = vector.shape_cast %113 : vector<2xi32> to vector<2x1xi32>
    %c7_i32 = arith.constant 7 : i32
    %115 = vector.broadcast %c7_i32 : i32 to vector<2x40xi32>
    %116 = arith.cmpi eq, %3, %115 : vector<2x40xi32>
    %117 = vector.shape_cast %114 : vector<2x1xi32> to vector<2x1xi32>
    %118 = vector.broadcast %117 : vector<2x1xi32> to vector<2x40xi32>
    %119 = arith.select %116, %118, %106 : vector<2x40xi1>, vector<2x40xi32>
    %120 = vector.extract_strided_slice %13 {offsets = [0, 8], sizes = [2, 1], strides = [1, 1]} : vector<2x40xi32> to vector<2x1xi32>
    %121 = vector.broadcast %120 : vector<2x1xi32> to vector<2x128xi32>
    %122 = arith.cmpi eq, %2, %121 : vector<2x128xi32>
    %123 = arith.ori %110, %122 : vector<2x128xi1>
    %c0_i32_21 = arith.constant 0 : i32
    %124 = vector.broadcast %c0_i32_21 : i32 to vector<2x128xi32>
    %125 = arith.select %122, %0, %124 : vector<2x128xi1>, vector<2x128xi32>
    %cst_22 = arith.constant dense<0> : vector<2xi32>
    %126 = vector.multi_reduction <add>, %125, %cst_22 [1] : vector<2x128xi32> to vector<2xi32>
    %127 = vector.shape_cast %126 : vector<2xi32> to vector<2x1xi32>
    %c8_i32 = arith.constant 8 : i32
    %128 = vector.broadcast %c8_i32 : i32 to vector<2x40xi32>
    %129 = arith.cmpi eq, %3, %128 : vector<2x40xi32>
    %130 = vector.shape_cast %127 : vector<2x1xi32> to vector<2x1xi32>
    %131 = vector.broadcast %130 : vector<2x1xi32> to vector<2x40xi32>
    %132 = arith.select %129, %131, %119 : vector<2x40xi1>, vector<2x40xi32>
    %133 = vector.extract_strided_slice %13 {offsets = [0, 9], sizes = [2, 1], strides = [1, 1]} : vector<2x40xi32> to vector<2x1xi32>
    %134 = vector.broadcast %133 : vector<2x1xi32> to vector<2x128xi32>
    %135 = arith.cmpi eq, %2, %134 : vector<2x128xi32>
    %136 = arith.ori %123, %135 : vector<2x128xi1>
    %c0_i32_23 = arith.constant 0 : i32
    %137 = vector.broadcast %c0_i32_23 : i32 to vector<2x128xi32>
    %138 = arith.select %135, %0, %137 : vector<2x128xi1>, vector<2x128xi32>
    %cst_24 = arith.constant dense<0> : vector<2xi32>
    %139 = vector.multi_reduction <add>, %138, %cst_24 [1] : vector<2x128xi32> to vector<2xi32>
    %140 = vector.shape_cast %139 : vector<2xi32> to vector<2x1xi32>
    %c9_i32 = arith.constant 9 : i32
    %141 = vector.broadcast %c9_i32 : i32 to vector<2x40xi32>
    %142 = arith.cmpi eq, %3, %141 : vector<2x40xi32>
    %143 = vector.shape_cast %140 : vector<2x1xi32> to vector<2x1xi32>
    %144 = vector.broadcast %143 : vector<2x1xi32> to vector<2x40xi32>
    %145 = arith.select %142, %144, %132 : vector<2x40xi1>, vector<2x40xi32>
    %146 = vector.extract_strided_slice %13 {offsets = [0, 10], sizes = [2, 1], strides = [1, 1]} : vector<2x40xi32> to vector<2x1xi32>
    %147 = vector.broadcast %146 : vector<2x1xi32> to vector<2x128xi32>
    %148 = arith.cmpi eq, %2, %147 : vector<2x128xi32>
    %149 = arith.ori %136, %148 : vector<2x128xi1>
    %c0_i32_25 = arith.constant 0 : i32
    %150 = vector.broadcast %c0_i32_25 : i32 to vector<2x128xi32>
    %151 = arith.select %148, %0, %150 : vector<2x128xi1>, vector<2x128xi32>
    %cst_26 = arith.constant dense<0> : vector<2xi32>
    %152 = vector.multi_reduction <add>, %151, %cst_26 [1] : vector<2x128xi32> to vector<2xi32>
    %153 = vector.shape_cast %152 : vector<2xi32> to vector<2x1xi32>
    %c10_i32 = arith.constant 10 : i32
    %154 = vector.broadcast %c10_i32 : i32 to vector<2x40xi32>
    %155 = arith.cmpi eq, %3, %154 : vector<2x40xi32>
    %156 = vector.shape_cast %153 : vector<2x1xi32> to vector<2x1xi32>
    %157 = vector.broadcast %156 : vector<2x1xi32> to vector<2x40xi32>
    %158 = arith.select %155, %157, %145 : vector<2x40xi1>, vector<2x40xi32>
    %159 = vector.extract_strided_slice %13 {offsets = [0, 11], sizes = [2, 1], strides = [1, 1]} : vector<2x40xi32> to vector<2x1xi32>
    %160 = vector.broadcast %159 : vector<2x1xi32> to vector<2x128xi32>
    %161 = arith.cmpi eq, %2, %160 : vector<2x128xi32>
    %162 = arith.ori %149, %161 : vector<2x128xi1>
    %c0_i32_27 = arith.constant 0 : i32
    %163 = vector.broadcast %c0_i32_27 : i32 to vector<2x128xi32>
    %164 = arith.select %161, %0, %163 : vector<2x128xi1>, vector<2x128xi32>
    %cst_28 = arith.constant dense<0> : vector<2xi32>
    %165 = vector.multi_reduction <add>, %164, %cst_28 [1] : vector<2x128xi32> to vector<2xi32>
    %166 = vector.shape_cast %165 : vector<2xi32> to vector<2x1xi32>
    %c11_i32 = arith.constant 11 : i32
    %167 = vector.broadcast %c11_i32 : i32 to vector<2x40xi32>
    %168 = arith.cmpi eq, %3, %167 : vector<2x40xi32>
    %169 = vector.shape_cast %166 : vector<2x1xi32> to vector<2x1xi32>
    %170 = vector.broadcast %169 : vector<2x1xi32> to vector<2x40xi32>
    %171 = arith.select %168, %170, %158 : vector<2x40xi1>, vector<2x40xi32>
    %172 = vector.extract_strided_slice %13 {offsets = [0, 12], sizes = [2, 1], strides = [1, 1]} : vector<2x40xi32> to vector<2x1xi32>
    %173 = vector.broadcast %172 : vector<2x1xi32> to vector<2x128xi32>
    %174 = arith.cmpi eq, %2, %173 : vector<2x128xi32>
    %175 = arith.ori %162, %174 : vector<2x128xi1>
    %c0_i32_29 = arith.constant 0 : i32
    %176 = vector.broadcast %c0_i32_29 : i32 to vector<2x128xi32>
    %177 = arith.select %174, %0, %176 : vector<2x128xi1>, vector<2x128xi32>
    %cst_30 = arith.constant dense<0> : vector<2xi32>
    %178 = vector.multi_reduction <add>, %177, %cst_30 [1] : vector<2x128xi32> to vector<2xi32>
    %179 = vector.shape_cast %178 : vector<2xi32> to vector<2x1xi32>
    %c12_i32 = arith.constant 12 : i32
    %180 = vector.broadcast %c12_i32 : i32 to vector<2x40xi32>
    %181 = arith.cmpi eq, %3, %180 : vector<2x40xi32>
    %182 = vector.shape_cast %179 : vector<2x1xi32> to vector<2x1xi32>
    %183 = vector.broadcast %182 : vector<2x1xi32> to vector<2x40xi32>
    %184 = arith.select %181, %183, %171 : vector<2x40xi1>, vector<2x40xi32>
    %185 = vector.extract_strided_slice %13 {offsets = [0, 13], sizes = [2, 1], strides = [1, 1]} : vector<2x40xi32> to vector<2x1xi32>
    %186 = vector.broadcast %185 : vector<2x1xi32> to vector<2x128xi32>
    %187 = arith.cmpi eq, %2, %186 : vector<2x128xi32>
    %188 = arith.ori %175, %187 : vector<2x128xi1>
    %c0_i32_31 = arith.constant 0 : i32
    %189 = vector.broadcast %c0_i32_31 : i32 to vector<2x128xi32>
    %190 = arith.select %187, %0, %189 : vector<2x128xi1>, vector<2x128xi32>
    %cst_32 = arith.constant dense<0> : vector<2xi32>
    %191 = vector.multi_reduction <add>, %190, %cst_32 [1] : vector<2x128xi32> to vector<2xi32>
    %192 = vector.shape_cast %191 : vector<2xi32> to vector<2x1xi32>
    %c13_i32 = arith.constant 13 : i32
    %193 = vector.broadcast %c13_i32 : i32 to vector<2x40xi32>
    %194 = arith.cmpi eq, %3, %193 : vector<2x40xi32>
    %195 = vector.shape_cast %192 : vector<2x1xi32> to vector<2x1xi32>
    %196 = vector.broadcast %195 : vector<2x1xi32> to vector<2x40xi32>
    %197 = arith.select %194, %196, %184 : vector<2x40xi1>, vector<2x40xi32>
    %198 = vector.extract_strided_slice %13 {offsets = [0, 14], sizes = [2, 1], strides = [1, 1]} : vector<2x40xi32> to vector<2x1xi32>
    %199 = vector.broadcast %198 : vector<2x1xi32> to vector<2x128xi32>
    %200 = arith.cmpi eq, %2, %199 : vector<2x128xi32>
    %201 = arith.ori %188, %200 : vector<2x128xi1>
    %c0_i32_33 = arith.constant 0 : i32
    %202 = vector.broadcast %c0_i32_33 : i32 to vector<2x128xi32>
    %203 = arith.select %200, %0, %202 : vector<2x128xi1>, vector<2x128xi32>
    %cst_34 = arith.constant dense<0> : vector<2xi32>
    %204 = vector.multi_reduction <add>, %203, %cst_34 [1] : vector<2x128xi32> to vector<2xi32>
    %205 = vector.shape_cast %204 : vector<2xi32> to vector<2x1xi32>
    %c14_i32 = arith.constant 14 : i32
    %206 = vector.broadcast %c14_i32 : i32 to vector<2x40xi32>
    %207 = arith.cmpi eq, %3, %206 : vector<2x40xi32>
    %208 = vector.shape_cast %205 : vector<2x1xi32> to vector<2x1xi32>
    %209 = vector.broadcast %208 : vector<2x1xi32> to vector<2x40xi32>
    %210 = arith.select %207, %209, %197 : vector<2x40xi1>, vector<2x40xi32>
    %211 = vector.extract_strided_slice %13 {offsets = [0, 15], sizes = [2, 1], strides = [1, 1]} : vector<2x40xi32> to vector<2x1xi32>
    %212 = vector.broadcast %211 : vector<2x1xi32> to vector<2x128xi32>
    %213 = arith.cmpi eq, %2, %212 : vector<2x128xi32>
    %214 = arith.ori %201, %213 : vector<2x128xi1>
    %c0_i32_35 = arith.constant 0 : i32
    %215 = vector.broadcast %c0_i32_35 : i32 to vector<2x128xi32>
    %216 = arith.select %213, %0, %215 : vector<2x128xi1>, vector<2x128xi32>
    %cst_36 = arith.constant dense<0> : vector<2xi32>
    %217 = vector.multi_reduction <add>, %216, %cst_36 [1] : vector<2x128xi32> to vector<2xi32>
    %218 = vector.shape_cast %217 : vector<2xi32> to vector<2x1xi32>
    %c15_i32 = arith.constant 15 : i32
    %219 = vector.broadcast %c15_i32 : i32 to vector<2x40xi32>
    %220 = arith.cmpi eq, %3, %219 : vector<2x40xi32>
    %221 = vector.shape_cast %218 : vector<2x1xi32> to vector<2x1xi32>
    %222 = vector.broadcast %221 : vector<2x1xi32> to vector<2x40xi32>
    %223 = arith.select %220, %222, %210 : vector<2x40xi1>, vector<2x40xi32>
    %224 = vector.extract_strided_slice %13 {offsets = [0, 16], sizes = [2, 1], strides = [1, 1]} : vector<2x40xi32> to vector<2x1xi32>
    %225 = vector.broadcast %224 : vector<2x1xi32> to vector<2x128xi32>
    %226 = arith.cmpi eq, %2, %225 : vector<2x128xi32>
    %227 = arith.ori %214, %226 : vector<2x128xi1>
    %c0_i32_37 = arith.constant 0 : i32
    %228 = vector.broadcast %c0_i32_37 : i32 to vector<2x128xi32>
    %229 = arith.select %226, %0, %228 : vector<2x128xi1>, vector<2x128xi32>
    %cst_38 = arith.constant dense<0> : vector<2xi32>
    %230 = vector.multi_reduction <add>, %229, %cst_38 [1] : vector<2x128xi32> to vector<2xi32>
    %231 = vector.shape_cast %230 : vector<2xi32> to vector<2x1xi32>
    %c16_i32 = arith.constant 16 : i32
    %232 = vector.broadcast %c16_i32 : i32 to vector<2x40xi32>
    %233 = arith.cmpi eq, %3, %232 : vector<2x40xi32>
    %234 = vector.shape_cast %231 : vector<2x1xi32> to vector<2x1xi32>
    %235 = vector.broadcast %234 : vector<2x1xi32> to vector<2x40xi32>
    %236 = arith.select %233, %235, %223 : vector<2x40xi1>, vector<2x40xi32>
    %237 = vector.extract_strided_slice %13 {offsets = [0, 17], sizes = [2, 1], strides = [1, 1]} : vector<2x40xi32> to vector<2x1xi32>
    %238 = vector.broadcast %237 : vector<2x1xi32> to vector<2x128xi32>
    %239 = arith.cmpi eq, %2, %238 : vector<2x128xi32>
    %240 = arith.ori %227, %239 : vector<2x128xi1>
    %c0_i32_39 = arith.constant 0 : i32
    %241 = vector.broadcast %c0_i32_39 : i32 to vector<2x128xi32>
    %242 = arith.select %239, %0, %241 : vector<2x128xi1>, vector<2x128xi32>
    %cst_40 = arith.constant dense<0> : vector<2xi32>
    %243 = vector.multi_reduction <add>, %242, %cst_40 [1] : vector<2x128xi32> to vector<2xi32>
    %244 = vector.shape_cast %243 : vector<2xi32> to vector<2x1xi32>
    %c17_i32 = arith.constant 17 : i32
    %245 = vector.broadcast %c17_i32 : i32 to vector<2x40xi32>
    %246 = arith.cmpi eq, %3, %245 : vector<2x40xi32>
    %247 = vector.shape_cast %244 : vector<2x1xi32> to vector<2x1xi32>
    %248 = vector.broadcast %247 : vector<2x1xi32> to vector<2x40xi32>
    %249 = arith.select %246, %248, %236 : vector<2x40xi1>, vector<2x40xi32>
    %250 = vector.extract_strided_slice %13 {offsets = [0, 18], sizes = [2, 1], strides = [1, 1]} : vector<2x40xi32> to vector<2x1xi32>
    %251 = vector.broadcast %250 : vector<2x1xi32> to vector<2x128xi32>
    %252 = arith.cmpi eq, %2, %251 : vector<2x128xi32>
    %253 = arith.ori %240, %252 : vector<2x128xi1>
    %c0_i32_41 = arith.constant 0 : i32
    %254 = vector.broadcast %c0_i32_41 : i32 to vector<2x128xi32>
    %255 = arith.select %252, %0, %254 : vector<2x128xi1>, vector<2x128xi32>
    %cst_42 = arith.constant dense<0> : vector<2xi32>
    %256 = vector.multi_reduction <add>, %255, %cst_42 [1] : vector<2x128xi32> to vector<2xi32>
    %257 = vector.shape_cast %256 : vector<2xi32> to vector<2x1xi32>
    %c18_i32 = arith.constant 18 : i32
    %258 = vector.broadcast %c18_i32 : i32 to vector<2x40xi32>
    %259 = arith.cmpi eq, %3, %258 : vector<2x40xi32>
    %260 = vector.shape_cast %257 : vector<2x1xi32> to vector<2x1xi32>
    %261 = vector.broadcast %260 : vector<2x1xi32> to vector<2x40xi32>
    %262 = arith.select %259, %261, %249 : vector<2x40xi1>, vector<2x40xi32>
    %263 = vector.extract_strided_slice %13 {offsets = [0, 19], sizes = [2, 1], strides = [1, 1]} : vector<2x40xi32> to vector<2x1xi32>
    %264 = vector.broadcast %263 : vector<2x1xi32> to vector<2x128xi32>
    %265 = arith.cmpi eq, %2, %264 : vector<2x128xi32>
    %266 = arith.ori %253, %265 : vector<2x128xi1>
    %c0_i32_43 = arith.constant 0 : i32
    %267 = vector.broadcast %c0_i32_43 : i32 to vector<2x128xi32>
    %268 = arith.select %265, %0, %267 : vector<2x128xi1>, vector<2x128xi32>
    %cst_44 = arith.constant dense<0> : vector<2xi32>
    %269 = vector.multi_reduction <add>, %268, %cst_44 [1] : vector<2x128xi32> to vector<2xi32>
    %270 = vector.shape_cast %269 : vector<2xi32> to vector<2x1xi32>
    %c19_i32 = arith.constant 19 : i32
    %271 = vector.broadcast %c19_i32 : i32 to vector<2x40xi32>
    %272 = arith.cmpi eq, %3, %271 : vector<2x40xi32>
    %273 = vector.shape_cast %270 : vector<2x1xi32> to vector<2x1xi32>
    %274 = vector.broadcast %273 : vector<2x1xi32> to vector<2x40xi32>
    %275 = arith.select %272, %274, %262 : vector<2x40xi1>, vector<2x40xi32>
    %276 = vector.extract_strided_slice %13 {offsets = [0, 20], sizes = [2, 1], strides = [1, 1]} : vector<2x40xi32> to vector<2x1xi32>
    %277 = vector.broadcast %276 : vector<2x1xi32> to vector<2x128xi32>
    %278 = arith.cmpi eq, %2, %277 : vector<2x128xi32>
    %279 = arith.ori %266, %278 : vector<2x128xi1>
    %c0_i32_45 = arith.constant 0 : i32
    %280 = vector.broadcast %c0_i32_45 : i32 to vector<2x128xi32>
    %281 = arith.select %278, %0, %280 : vector<2x128xi1>, vector<2x128xi32>
    %cst_46 = arith.constant dense<0> : vector<2xi32>
    %282 = vector.multi_reduction <add>, %281, %cst_46 [1] : vector<2x128xi32> to vector<2xi32>
    %283 = vector.shape_cast %282 : vector<2xi32> to vector<2x1xi32>
    %c20_i32_47 = arith.constant 20 : i32
    %284 = vector.broadcast %c20_i32_47 : i32 to vector<2x40xi32>
    %285 = arith.cmpi eq, %3, %284 : vector<2x40xi32>
    %286 = vector.shape_cast %283 : vector<2x1xi32> to vector<2x1xi32>
    %287 = vector.broadcast %286 : vector<2x1xi32> to vector<2x40xi32>
    %288 = arith.select %285, %287, %275 : vector<2x40xi1>, vector<2x40xi32>
    %289 = vector.extract_strided_slice %13 {offsets = [0, 21], sizes = [2, 1], strides = [1, 1]} : vector<2x40xi32> to vector<2x1xi32>
    %290 = vector.broadcast %289 : vector<2x1xi32> to vector<2x128xi32>
    %291 = arith.cmpi eq, %2, %290 : vector<2x128xi32>
    %292 = arith.ori %279, %291 : vector<2x128xi1>
    %c0_i32_48 = arith.constant 0 : i32
    %293 = vector.broadcast %c0_i32_48 : i32 to vector<2x128xi32>
    %294 = arith.select %291, %0, %293 : vector<2x128xi1>, vector<2x128xi32>
    %cst_49 = arith.constant dense<0> : vector<2xi32>
    %295 = vector.multi_reduction <add>, %294, %cst_49 [1] : vector<2x128xi32> to vector<2xi32>
    %296 = vector.shape_cast %295 : vector<2xi32> to vector<2x1xi32>
    %c21_i32 = arith.constant 21 : i32
    %297 = vector.broadcast %c21_i32 : i32 to vector<2x40xi32>
    %298 = arith.cmpi eq, %3, %297 : vector<2x40xi32>
    %299 = vector.shape_cast %296 : vector<2x1xi32> to vector<2x1xi32>
    %300 = vector.broadcast %299 : vector<2x1xi32> to vector<2x40xi32>
    %301 = arith.select %298, %300, %288 : vector<2x40xi1>, vector<2x40xi32>
    %302 = vector.extract_strided_slice %13 {offsets = [0, 22], sizes = [2, 1], strides = [1, 1]} : vector<2x40xi32> to vector<2x1xi32>
    %303 = vector.broadcast %302 : vector<2x1xi32> to vector<2x128xi32>
    %304 = arith.cmpi eq, %2, %303 : vector<2x128xi32>
    %305 = arith.ori %292, %304 : vector<2x128xi1>
    %c0_i32_50 = arith.constant 0 : i32
    %306 = vector.broadcast %c0_i32_50 : i32 to vector<2x128xi32>
    %307 = arith.select %304, %0, %306 : vector<2x128xi1>, vector<2x128xi32>
    %cst_51 = arith.constant dense<0> : vector<2xi32>
    %308 = vector.multi_reduction <add>, %307, %cst_51 [1] : vector<2x128xi32> to vector<2xi32>
    %309 = vector.shape_cast %308 : vector<2xi32> to vector<2x1xi32>
    %c22_i32 = arith.constant 22 : i32
    %310 = vector.broadcast %c22_i32 : i32 to vector<2x40xi32>
    %311 = arith.cmpi eq, %3, %310 : vector<2x40xi32>
    %312 = vector.shape_cast %309 : vector<2x1xi32> to vector<2x1xi32>
    %313 = vector.broadcast %312 : vector<2x1xi32> to vector<2x40xi32>
    %314 = arith.select %311, %313, %301 : vector<2x40xi1>, vector<2x40xi32>
    %315 = vector.extract_strided_slice %13 {offsets = [0, 23], sizes = [2, 1], strides = [1, 1]} : vector<2x40xi32> to vector<2x1xi32>
    %316 = vector.broadcast %315 : vector<2x1xi32> to vector<2x128xi32>
    %317 = arith.cmpi eq, %2, %316 : vector<2x128xi32>
    %318 = arith.ori %305, %317 : vector<2x128xi1>
    %c0_i32_52 = arith.constant 0 : i32
    %319 = vector.broadcast %c0_i32_52 : i32 to vector<2x128xi32>
    %320 = arith.select %317, %0, %319 : vector<2x128xi1>, vector<2x128xi32>
    %cst_53 = arith.constant dense<0> : vector<2xi32>
    %321 = vector.multi_reduction <add>, %320, %cst_53 [1] : vector<2x128xi32> to vector<2xi32>
    %322 = vector.shape_cast %321 : vector<2xi32> to vector<2x1xi32>
    %c23_i32 = arith.constant 23 : i32
    %323 = vector.broadcast %c23_i32 : i32 to vector<2x40xi32>
    %324 = arith.cmpi eq, %3, %323 : vector<2x40xi32>
    %325 = vector.shape_cast %322 : vector<2x1xi32> to vector<2x1xi32>
    %326 = vector.broadcast %325 : vector<2x1xi32> to vector<2x40xi32>
    %327 = arith.select %324, %326, %314 : vector<2x40xi1>, vector<2x40xi32>
    %328 = vector.extract_strided_slice %13 {offsets = [0, 24], sizes = [2, 1], strides = [1, 1]} : vector<2x40xi32> to vector<2x1xi32>
    %329 = vector.broadcast %328 : vector<2x1xi32> to vector<2x128xi32>
    %330 = arith.cmpi eq, %2, %329 : vector<2x128xi32>
    %331 = arith.ori %318, %330 : vector<2x128xi1>
    %c0_i32_54 = arith.constant 0 : i32
    %332 = vector.broadcast %c0_i32_54 : i32 to vector<2x128xi32>
    %333 = arith.select %330, %0, %332 : vector<2x128xi1>, vector<2x128xi32>
    %cst_55 = arith.constant dense<0> : vector<2xi32>
    %334 = vector.multi_reduction <add>, %333, %cst_55 [1] : vector<2x128xi32> to vector<2xi32>
    %335 = vector.shape_cast %334 : vector<2xi32> to vector<2x1xi32>
    %c24_i32 = arith.constant 24 : i32
    %336 = vector.broadcast %c24_i32 : i32 to vector<2x40xi32>
    %337 = arith.cmpi eq, %3, %336 : vector<2x40xi32>
    %338 = vector.shape_cast %335 : vector<2x1xi32> to vector<2x1xi32>
    %339 = vector.broadcast %338 : vector<2x1xi32> to vector<2x40xi32>
    %340 = arith.select %337, %339, %327 : vector<2x40xi1>, vector<2x40xi32>
    %341 = vector.extract_strided_slice %13 {offsets = [0, 25], sizes = [2, 1], strides = [1, 1]} : vector<2x40xi32> to vector<2x1xi32>
    %342 = vector.broadcast %341 : vector<2x1xi32> to vector<2x128xi32>
    %343 = arith.cmpi eq, %2, %342 : vector<2x128xi32>
    %344 = arith.ori %331, %343 : vector<2x128xi1>
    %c0_i32_56 = arith.constant 0 : i32
    %345 = vector.broadcast %c0_i32_56 : i32 to vector<2x128xi32>
    %346 = arith.select %343, %0, %345 : vector<2x128xi1>, vector<2x128xi32>
    %cst_57 = arith.constant dense<0> : vector<2xi32>
    %347 = vector.multi_reduction <add>, %346, %cst_57 [1] : vector<2x128xi32> to vector<2xi32>
    %348 = vector.shape_cast %347 : vector<2xi32> to vector<2x1xi32>
    %c25_i32 = arith.constant 25 : i32
    %349 = vector.broadcast %c25_i32 : i32 to vector<2x40xi32>
    %350 = arith.cmpi eq, %3, %349 : vector<2x40xi32>
    %351 = vector.shape_cast %348 : vector<2x1xi32> to vector<2x1xi32>
    %352 = vector.broadcast %351 : vector<2x1xi32> to vector<2x40xi32>
    %353 = arith.select %350, %352, %340 : vector<2x40xi1>, vector<2x40xi32>
    %354 = vector.extract_strided_slice %13 {offsets = [0, 26], sizes = [2, 1], strides = [1, 1]} : vector<2x40xi32> to vector<2x1xi32>
    %355 = vector.broadcast %354 : vector<2x1xi32> to vector<2x128xi32>
    %356 = arith.cmpi eq, %2, %355 : vector<2x128xi32>
    %357 = arith.ori %344, %356 : vector<2x128xi1>
    %c0_i32_58 = arith.constant 0 : i32
    %358 = vector.broadcast %c0_i32_58 : i32 to vector<2x128xi32>
    %359 = arith.select %356, %0, %358 : vector<2x128xi1>, vector<2x128xi32>
    %cst_59 = arith.constant dense<0> : vector<2xi32>
    %360 = vector.multi_reduction <add>, %359, %cst_59 [1] : vector<2x128xi32> to vector<2xi32>
    %361 = vector.shape_cast %360 : vector<2xi32> to vector<2x1xi32>
    %c26_i32 = arith.constant 26 : i32
    %362 = vector.broadcast %c26_i32 : i32 to vector<2x40xi32>
    %363 = arith.cmpi eq, %3, %362 : vector<2x40xi32>
    %364 = vector.shape_cast %361 : vector<2x1xi32> to vector<2x1xi32>
    %365 = vector.broadcast %364 : vector<2x1xi32> to vector<2x40xi32>
    %366 = arith.select %363, %365, %353 : vector<2x40xi1>, vector<2x40xi32>
    %367 = vector.extract_strided_slice %13 {offsets = [0, 27], sizes = [2, 1], strides = [1, 1]} : vector<2x40xi32> to vector<2x1xi32>
    %368 = vector.broadcast %367 : vector<2x1xi32> to vector<2x128xi32>
    %369 = arith.cmpi eq, %2, %368 : vector<2x128xi32>
    %370 = arith.ori %357, %369 : vector<2x128xi1>
    %c0_i32_60 = arith.constant 0 : i32
    %371 = vector.broadcast %c0_i32_60 : i32 to vector<2x128xi32>
    %372 = arith.select %369, %0, %371 : vector<2x128xi1>, vector<2x128xi32>
    %cst_61 = arith.constant dense<0> : vector<2xi32>
    %373 = vector.multi_reduction <add>, %372, %cst_61 [1] : vector<2x128xi32> to vector<2xi32>
    %374 = vector.shape_cast %373 : vector<2xi32> to vector<2x1xi32>
    %c27_i32 = arith.constant 27 : i32
    %375 = vector.broadcast %c27_i32 : i32 to vector<2x40xi32>
    %376 = arith.cmpi eq, %3, %375 : vector<2x40xi32>
    %377 = vector.shape_cast %374 : vector<2x1xi32> to vector<2x1xi32>
    %378 = vector.broadcast %377 : vector<2x1xi32> to vector<2x40xi32>
    %379 = arith.select %376, %378, %366 : vector<2x40xi1>, vector<2x40xi32>
    %380 = vector.extract_strided_slice %13 {offsets = [0, 28], sizes = [2, 1], strides = [1, 1]} : vector<2x40xi32> to vector<2x1xi32>
    %381 = vector.broadcast %380 : vector<2x1xi32> to vector<2x128xi32>
    %382 = arith.cmpi eq, %2, %381 : vector<2x128xi32>
    %383 = arith.ori %370, %382 : vector<2x128xi1>
    %c0_i32_62 = arith.constant 0 : i32
    %384 = vector.broadcast %c0_i32_62 : i32 to vector<2x128xi32>
    %385 = arith.select %382, %0, %384 : vector<2x128xi1>, vector<2x128xi32>
    %cst_63 = arith.constant dense<0> : vector<2xi32>
    %386 = vector.multi_reduction <add>, %385, %cst_63 [1] : vector<2x128xi32> to vector<2xi32>
    %387 = vector.shape_cast %386 : vector<2xi32> to vector<2x1xi32>
    %c28_i32 = arith.constant 28 : i32
    %388 = vector.broadcast %c28_i32 : i32 to vector<2x40xi32>
    %389 = arith.cmpi eq, %3, %388 : vector<2x40xi32>
    %390 = vector.shape_cast %387 : vector<2x1xi32> to vector<2x1xi32>
    %391 = vector.broadcast %390 : vector<2x1xi32> to vector<2x40xi32>
    %392 = arith.select %389, %391, %379 : vector<2x40xi1>, vector<2x40xi32>
    %393 = vector.extract_strided_slice %13 {offsets = [0, 29], sizes = [2, 1], strides = [1, 1]} : vector<2x40xi32> to vector<2x1xi32>
    %394 = vector.broadcast %393 : vector<2x1xi32> to vector<2x128xi32>
    %395 = arith.cmpi eq, %2, %394 : vector<2x128xi32>
    %396 = arith.ori %383, %395 : vector<2x128xi1>
    %c0_i32_64 = arith.constant 0 : i32
    %397 = vector.broadcast %c0_i32_64 : i32 to vector<2x128xi32>
    %398 = arith.select %395, %0, %397 : vector<2x128xi1>, vector<2x128xi32>
    %cst_65 = arith.constant dense<0> : vector<2xi32>
    %399 = vector.multi_reduction <add>, %398, %cst_65 [1] : vector<2x128xi32> to vector<2xi32>
    %400 = vector.shape_cast %399 : vector<2xi32> to vector<2x1xi32>
    %c29_i32 = arith.constant 29 : i32
    %401 = vector.broadcast %c29_i32 : i32 to vector<2x40xi32>
    %402 = arith.cmpi eq, %3, %401 : vector<2x40xi32>
    %403 = vector.shape_cast %400 : vector<2x1xi32> to vector<2x1xi32>
    %404 = vector.broadcast %403 : vector<2x1xi32> to vector<2x40xi32>
    %405 = arith.select %402, %404, %392 : vector<2x40xi1>, vector<2x40xi32>
    %406 = vector.extract_strided_slice %13 {offsets = [0, 30], sizes = [2, 1], strides = [1, 1]} : vector<2x40xi32> to vector<2x1xi32>
    %407 = vector.broadcast %406 : vector<2x1xi32> to vector<2x128xi32>
    %408 = arith.cmpi eq, %2, %407 : vector<2x128xi32>
    %409 = arith.ori %396, %408 : vector<2x128xi1>
    %c0_i32_66 = arith.constant 0 : i32
    %410 = vector.broadcast %c0_i32_66 : i32 to vector<2x128xi32>
    %411 = arith.select %408, %0, %410 : vector<2x128xi1>, vector<2x128xi32>
    %cst_67 = arith.constant dense<0> : vector<2xi32>
    %412 = vector.multi_reduction <add>, %411, %cst_67 [1] : vector<2x128xi32> to vector<2xi32>
    %413 = vector.shape_cast %412 : vector<2xi32> to vector<2x1xi32>
    %c30_i32 = arith.constant 30 : i32
    %414 = vector.broadcast %c30_i32 : i32 to vector<2x40xi32>
    %415 = arith.cmpi eq, %3, %414 : vector<2x40xi32>
    %416 = vector.shape_cast %413 : vector<2x1xi32> to vector<2x1xi32>
    %417 = vector.broadcast %416 : vector<2x1xi32> to vector<2x40xi32>
    %418 = arith.select %415, %417, %405 : vector<2x40xi1>, vector<2x40xi32>
    %419 = vector.extract_strided_slice %13 {offsets = [0, 31], sizes = [2, 1], strides = [1, 1]} : vector<2x40xi32> to vector<2x1xi32>
    %420 = vector.broadcast %419 : vector<2x1xi32> to vector<2x128xi32>
    %421 = arith.cmpi eq, %2, %420 : vector<2x128xi32>
    %422 = arith.ori %409, %421 : vector<2x128xi1>
    %c0_i32_68 = arith.constant 0 : i32
    %423 = vector.broadcast %c0_i32_68 : i32 to vector<2x128xi32>
    %424 = arith.select %421, %0, %423 : vector<2x128xi1>, vector<2x128xi32>
    %cst_69 = arith.constant dense<0> : vector<2xi32>
    %425 = vector.multi_reduction <add>, %424, %cst_69 [1] : vector<2x128xi32> to vector<2xi32>
    %426 = vector.shape_cast %425 : vector<2xi32> to vector<2x1xi32>
    %c31_i32 = arith.constant 31 : i32
    %427 = vector.broadcast %c31_i32 : i32 to vector<2x40xi32>
    %428 = arith.cmpi eq, %3, %427 : vector<2x40xi32>
    %429 = vector.shape_cast %426 : vector<2x1xi32> to vector<2x1xi32>
    %430 = vector.broadcast %429 : vector<2x1xi32> to vector<2x40xi32>
    %431 = arith.select %428, %430, %418 : vector<2x40xi1>, vector<2x40xi32>
    %432 = vector.extract_strided_slice %13 {offsets = [0, 32], sizes = [2, 1], strides = [1, 1]} : vector<2x40xi32> to vector<2x1xi32>
    %433 = vector.broadcast %432 : vector<2x1xi32> to vector<2x128xi32>
    %434 = arith.cmpi eq, %2, %433 : vector<2x128xi32>
    %435 = arith.ori %422, %434 : vector<2x128xi1>
    %c0_i32_70 = arith.constant 0 : i32
    %436 = vector.broadcast %c0_i32_70 : i32 to vector<2x128xi32>
    %437 = arith.select %434, %0, %436 : vector<2x128xi1>, vector<2x128xi32>
    %cst_71 = arith.constant dense<0> : vector<2xi32>
    %438 = vector.multi_reduction <add>, %437, %cst_71 [1] : vector<2x128xi32> to vector<2xi32>
    %439 = vector.shape_cast %438 : vector<2xi32> to vector<2x1xi32>
    %c32_i32 = arith.constant 32 : i32
    %440 = vector.broadcast %c32_i32 : i32 to vector<2x40xi32>
    %441 = arith.cmpi eq, %3, %440 : vector<2x40xi32>
    %442 = vector.shape_cast %439 : vector<2x1xi32> to vector<2x1xi32>
    %443 = vector.broadcast %442 : vector<2x1xi32> to vector<2x40xi32>
    %444 = arith.select %441, %443, %431 : vector<2x40xi1>, vector<2x40xi32>
    %445 = vector.extract_strided_slice %13 {offsets = [0, 33], sizes = [2, 1], strides = [1, 1]} : vector<2x40xi32> to vector<2x1xi32>
    %446 = vector.broadcast %445 : vector<2x1xi32> to vector<2x128xi32>
    %447 = arith.cmpi eq, %2, %446 : vector<2x128xi32>
    %448 = arith.ori %435, %447 : vector<2x128xi1>
    %c0_i32_72 = arith.constant 0 : i32
    %449 = vector.broadcast %c0_i32_72 : i32 to vector<2x128xi32>
    %450 = arith.select %447, %0, %449 : vector<2x128xi1>, vector<2x128xi32>
    %cst_73 = arith.constant dense<0> : vector<2xi32>
    %451 = vector.multi_reduction <add>, %450, %cst_73 [1] : vector<2x128xi32> to vector<2xi32>
    %452 = vector.shape_cast %451 : vector<2xi32> to vector<2x1xi32>
    %c33_i32 = arith.constant 33 : i32
    %453 = vector.broadcast %c33_i32 : i32 to vector<2x40xi32>
    %454 = arith.cmpi eq, %3, %453 : vector<2x40xi32>
    %455 = vector.shape_cast %452 : vector<2x1xi32> to vector<2x1xi32>
    %456 = vector.broadcast %455 : vector<2x1xi32> to vector<2x40xi32>
    %457 = arith.select %454, %456, %444 : vector<2x40xi1>, vector<2x40xi32>
    %458 = vector.extract_strided_slice %13 {offsets = [0, 34], sizes = [2, 1], strides = [1, 1]} : vector<2x40xi32> to vector<2x1xi32>
    %459 = vector.broadcast %458 : vector<2x1xi32> to vector<2x128xi32>
    %460 = arith.cmpi eq, %2, %459 : vector<2x128xi32>
    %461 = arith.ori %448, %460 : vector<2x128xi1>
    %c0_i32_74 = arith.constant 0 : i32
    %462 = vector.broadcast %c0_i32_74 : i32 to vector<2x128xi32>
    %463 = arith.select %460, %0, %462 : vector<2x128xi1>, vector<2x128xi32>
    %cst_75 = arith.constant dense<0> : vector<2xi32>
    %464 = vector.multi_reduction <add>, %463, %cst_75 [1] : vector<2x128xi32> to vector<2xi32>
    %465 = vector.shape_cast %464 : vector<2xi32> to vector<2x1xi32>
    %c34_i32 = arith.constant 34 : i32
    %466 = vector.broadcast %c34_i32 : i32 to vector<2x40xi32>
    %467 = arith.cmpi eq, %3, %466 : vector<2x40xi32>
    %468 = vector.shape_cast %465 : vector<2x1xi32> to vector<2x1xi32>
    %469 = vector.broadcast %468 : vector<2x1xi32> to vector<2x40xi32>
    %470 = arith.select %467, %469, %457 : vector<2x40xi1>, vector<2x40xi32>
    %471 = vector.extract_strided_slice %13 {offsets = [0, 35], sizes = [2, 1], strides = [1, 1]} : vector<2x40xi32> to vector<2x1xi32>
    %472 = vector.broadcast %471 : vector<2x1xi32> to vector<2x128xi32>
    %473 = arith.cmpi eq, %2, %472 : vector<2x128xi32>
    %474 = arith.ori %461, %473 : vector<2x128xi1>
    %c0_i32_76 = arith.constant 0 : i32
    %475 = vector.broadcast %c0_i32_76 : i32 to vector<2x128xi32>
    %476 = arith.select %473, %0, %475 : vector<2x128xi1>, vector<2x128xi32>
    %cst_77 = arith.constant dense<0> : vector<2xi32>
    %477 = vector.multi_reduction <add>, %476, %cst_77 [1] : vector<2x128xi32> to vector<2xi32>
    %478 = vector.shape_cast %477 : vector<2xi32> to vector<2x1xi32>
    %c35_i32 = arith.constant 35 : i32
    %479 = vector.broadcast %c35_i32 : i32 to vector<2x40xi32>
    %480 = arith.cmpi eq, %3, %479 : vector<2x40xi32>
    %481 = vector.shape_cast %478 : vector<2x1xi32> to vector<2x1xi32>
    %482 = vector.broadcast %481 : vector<2x1xi32> to vector<2x40xi32>
    %483 = arith.select %480, %482, %470 : vector<2x40xi1>, vector<2x40xi32>
    %484 = vector.extract_strided_slice %13 {offsets = [0, 36], sizes = [2, 1], strides = [1, 1]} : vector<2x40xi32> to vector<2x1xi32>
    %485 = vector.broadcast %484 : vector<2x1xi32> to vector<2x128xi32>
    %486 = arith.cmpi eq, %2, %485 : vector<2x128xi32>
    %487 = arith.ori %474, %486 : vector<2x128xi1>
    %c0_i32_78 = arith.constant 0 : i32
    %488 = vector.broadcast %c0_i32_78 : i32 to vector<2x128xi32>
    %489 = arith.select %486, %0, %488 : vector<2x128xi1>, vector<2x128xi32>
    %cst_79 = arith.constant dense<0> : vector<2xi32>
    %490 = vector.multi_reduction <add>, %489, %cst_79 [1] : vector<2x128xi32> to vector<2xi32>
    %491 = vector.shape_cast %490 : vector<2xi32> to vector<2x1xi32>
    %c36_i32 = arith.constant 36 : i32
    %492 = vector.broadcast %c36_i32 : i32 to vector<2x40xi32>
    %493 = arith.cmpi eq, %3, %492 : vector<2x40xi32>
    %494 = vector.shape_cast %491 : vector<2x1xi32> to vector<2x1xi32>
    %495 = vector.broadcast %494 : vector<2x1xi32> to vector<2x40xi32>
    %496 = arith.select %493, %495, %483 : vector<2x40xi1>, vector<2x40xi32>
    %497 = vector.extract_strided_slice %13 {offsets = [0, 37], sizes = [2, 1], strides = [1, 1]} : vector<2x40xi32> to vector<2x1xi32>
    %498 = vector.broadcast %497 : vector<2x1xi32> to vector<2x128xi32>
    %499 = arith.cmpi eq, %2, %498 : vector<2x128xi32>
    %500 = arith.ori %487, %499 : vector<2x128xi1>
    %c0_i32_80 = arith.constant 0 : i32
    %501 = vector.broadcast %c0_i32_80 : i32 to vector<2x128xi32>
    %502 = arith.select %499, %0, %501 : vector<2x128xi1>, vector<2x128xi32>
    %cst_81 = arith.constant dense<0> : vector<2xi32>
    %503 = vector.multi_reduction <add>, %502, %cst_81 [1] : vector<2x128xi32> to vector<2xi32>
    %504 = vector.shape_cast %503 : vector<2xi32> to vector<2x1xi32>
    %c37_i32 = arith.constant 37 : i32
    %505 = vector.broadcast %c37_i32 : i32 to vector<2x40xi32>
    %506 = arith.cmpi eq, %3, %505 : vector<2x40xi32>
    %507 = vector.shape_cast %504 : vector<2x1xi32> to vector<2x1xi32>
    %508 = vector.broadcast %507 : vector<2x1xi32> to vector<2x40xi32>
    %509 = arith.select %506, %508, %496 : vector<2x40xi1>, vector<2x40xi32>
    %510 = vector.extract_strided_slice %13 {offsets = [0, 38], sizes = [2, 1], strides = [1, 1]} : vector<2x40xi32> to vector<2x1xi32>
    %511 = vector.broadcast %510 : vector<2x1xi32> to vector<2x128xi32>
    %512 = arith.cmpi eq, %2, %511 : vector<2x128xi32>
    %513 = arith.ori %500, %512 : vector<2x128xi1>
    %c0_i32_82 = arith.constant 0 : i32
    %514 = vector.broadcast %c0_i32_82 : i32 to vector<2x128xi32>
    %515 = arith.select %512, %0, %514 : vector<2x128xi1>, vector<2x128xi32>
    %cst_83 = arith.constant dense<0> : vector<2xi32>
    %516 = vector.multi_reduction <add>, %515, %cst_83 [1] : vector<2x128xi32> to vector<2xi32>
    %517 = vector.shape_cast %516 : vector<2xi32> to vector<2x1xi32>
    %c38_i32 = arith.constant 38 : i32
    %518 = vector.broadcast %c38_i32 : i32 to vector<2x40xi32>
    %519 = arith.cmpi eq, %3, %518 : vector<2x40xi32>
    %520 = vector.shape_cast %517 : vector<2x1xi32> to vector<2x1xi32>
    %521 = vector.broadcast %520 : vector<2x1xi32> to vector<2x40xi32>
    %522 = arith.select %519, %521, %509 : vector<2x40xi1>, vector<2x40xi32>
    %523 = vector.extract_strided_slice %13 {offsets = [0, 39], sizes = [2, 1], strides = [1, 1]} : vector<2x40xi32> to vector<2x1xi32>
    %524 = vector.broadcast %523 : vector<2x1xi32> to vector<2x128xi32>
    %525 = arith.cmpi eq, %2, %524 : vector<2x128xi32>
    %526 = arith.ori %513, %525 : vector<2x128xi1>
    %c0_i32_84 = arith.constant 0 : i32
    %527 = vector.broadcast %c0_i32_84 : i32 to vector<2x128xi32>
    %528 = arith.select %525, %0, %527 : vector<2x128xi1>, vector<2x128xi32>
    %cst_85 = arith.constant dense<0> : vector<2xi32>
    %529 = vector.multi_reduction <add>, %528, %cst_85 [1] : vector<2x128xi32> to vector<2xi32>
    %530 = vector.shape_cast %529 : vector<2xi32> to vector<2x1xi32>
    %c39_i32 = arith.constant 39 : i32
    %531 = vector.broadcast %c39_i32 : i32 to vector<2x40xi32>
    %532 = arith.cmpi eq, %3, %531 : vector<2x40xi32>
    %533 = vector.shape_cast %530 : vector<2x1xi32> to vector<2x1xi32>
    %534 = vector.broadcast %533 : vector<2x1xi32> to vector<2x40xi32>
    %535 = arith.select %532, %534, %522 : vector<2x40xi1>, vector<2x40xi32>
    %c50264_i32 = arith.constant 50264 : i32
    %536 = vector.broadcast %c50264_i32 : i32 to vector<2x128xi32>
    %537 = arith.select %526, %536, %0 : vector<2x128xi1>, vector<2x128xi32>
    %c0_i32_86 = arith.constant 0 : i32
    %538 = vector.broadcast %c0_i32_86 : i32 to vector<2x40xi32>
    %539 = arith.cmpi sge, %1, %538 : vector<2x40xi32>
    %c0_i32_87 = arith.constant 0 : i32
    %540 = vector.broadcast %c0_i32_87 : i32 to vector<2x40xi32>
    %541 = arith.select %539, %1, %540 : vector<2x40xi1>, vector<2x40xi32>
    %c0_i32_88 = arith.constant 0 : i32
    %542 = vector.broadcast %c0_i32_88 : i32 to vector<2x48xi32>
    %543 = tpu.concatenate %537, %535, %541, %542 in 1 : vector<2x128xi32>, vector<2x40xi32>, vector<2x40xi32>, vector<2x48xi32> -> vector<2x256xi32>
    %c0_89 = arith.constant 0 : index
    %c0_90 = arith.constant 0 : index
    %544 = vector.load %arg3[%c0_89, %c0_90] : memref<2x256xi32, #tpu.memory_space<vmem>>, vector<2x256xi32>
    tpu.vector_store %arg3[%c0_89, %c0_90], %543 {strides = array<i32>} : memref<2x256xi32, #tpu.memory_space<vmem>>, vector<2x256xi32>,
    return
  }
  func.func @transform_0(%arg0: i32) -> (i32, i32) {
    %c0_i32 = arith.constant 0 : i32
    %c0_i32_0 = arith.constant 0 : i32
    return %arg0, %c0_i32 : i32, i32
  }
  func.func @transform_1(%arg0: i32) -> (i32, i32) {
    %c0_i32 = arith.constant 0 : i32
    %c0_i32_0 = arith.constant 0 : i32
    return %arg0, %c0_i32 : i32, i32
  }
  func.func @transform_2(%arg0: i32) -> (i32, i32) {
    %c0_i32 = arith.constant 0 : i32
    %c0_i32_0 = arith.constant 0 : i32
    return %arg0, %c0_i32 : i32, i32
  }
}

</mosaic_0001>

<bundles_post_ra>
// kernel: tpu_custom_call.1
= control target key start
LH: loop header
LB: loop body
LE: loop exit
PB: predicated region body
PF: predicated region fallthrough
CT: control target
= control target key end

     0   :  { %7 = vsyncpa [#allocation3], 0  ;;  %s1535_s0 = inlined_call_operand.hbm [shape: s32[2,128], index: 0, kind: input, shape index: {}]   ;;  %s1536_s1 = inlined_call_operand.hbm [shape: s32[2,40], index: 1, kind: input, shape index: {}]   ;;  %s1537_s2 = inlined_call_operand.hbm [shape: s32[2,256], index: 2, kind: output, shape index: {}]  }
   0x1   :  { %8 = vsyncpa [#allocation6], 0 }
   0x2   :  { %9 = vsyncpa [#allocation4], 0  ;;  %s15_s11 = sshll.u32 %s1535_s0, 4  ;;  %s1082_s12 = smov [#allocation2]   ;;  %s16_s11 = int_to_ptr.hbm [resolvable:$true] %s15_s11 }
   0x3   :  { %s17_s13 = sshll.u32 %s1082_s12, 4  ;;  %s26_s16 = sshll.u32 %s1536_s1, 4  ;;  %s18_s13 = int_to_ptr.vmem [resolvable:$true] %s17_s13  ;;  %s27_s16 = int_to_ptr.hbm [resolvable:$true] %s26_s16 }
   0x4   :  { %20 = dma.hbm_to_vmem [thread:$0]  %s16_s11, 32, %s18_s13, [#allocation3]  }
   0x5   :  { %s1083_s17 = smov [#allocation5]  }
   0x6   :  { %s28_s18 = sshll.u32 %s1083_s17, 4  ;;  %s29_s18 = int_to_ptr.vmem [resolvable:$true] %s28_s18 }
   0x7   :  { %31 = dma.hbm_to_vmem [thread:$0]  %s27_s16, 32, %s29_s18, [#allocation6]  }
   0x8   :  { %1076 = dma.done.wait [#allocation3], 32  }
   0x9   :  { %1077 = vsyncadd [#allocation3], 4294967264 }
   0xa   :  { %1078 = dma.done.wait [#allocation6], 32  }
   0xb   :  { %1079 = vsyncadd [#allocation6], 4294967264  ;;  %v42_v0 = vlaneseq  ;;  %v1084_v1 = vmov 1   ;;  %v1085_v2 = vmov 0   ;;  %v1086_v4 = vmov 2   ;;  %s1124_s0 = smov 40  }
   0xc   :  { %963 = vset.pattern.permute.xlu1 %v1084_v1  ;;  %962 = vset.pattern.permute.xlu0 %v1085_v2  ;;  %v1150_v6 = vld [vmem:[#allocation5] sm:$0x3]  ;;  %v1087_v9 = vmov 4   ;;  %v1088_v10 = vmov 3   ;;  %v1089_v11 = vmov 5   ;;  %vm54_vm2 = vcmask 1041408  }
   0xd   :  { %v1147_v3 = vand.u32 127, %v42_v0  ;;  %964 = vset.pattern.permute.xlu2 %v1086_v4  ;;  %vm44_vm1 = vcmp.ge.s32.totalorder %v1150_v6, 0  ;;  %v1164_v13 = vld [vmem:[#allocation2] sm:$0x3]  ;;  %v1090_v16 = vmov 6   ;;  %v1091_v46 = vmov 7  }
   0xe   :  { %s1125_s1 = smov [#allocation7]   ;;  %s907_s22 = sshll.u32 %s1537_s2, 4  ;;  %s908_s22 = int_to_ptr.hbm [resolvable:$true] %s907_s22 }
   0xf   :  { %vm45_vm0 = vcmp.ge.s32.totalorder %v1147_v3, 20  ;;  %vm68_vm14 = vcmp.eq.s32.totalorder %v1147_v3, 0  ;;  %vm89_vm15 = vcmp.eq.s32.totalorder %v1147_v3, 1  ;;  %s905_s19 = sshll.u32 %s1125_s1, 4  ;;  %s906_s19 = int_to_ptr.vmem [resolvable:$true] %s905_s19 }
  0x10   :  { %v46_v5 = vsel %vm45_vm0, 64, %v1085_v2  ;;  %vm110_vm0 = vcmp.eq.s32.totalorder %v1147_v3, 2 }
  0x11   :  { %v47_v7 = vadd.s32 %v46_v5, %v1150_v6 }
  0x13   :  { %v1156_v8 = vsel %vm44_vm1, %v47_v7, 4294967295 }
  0x14   :  { %71 = vperm.xlu1 %963, %v1156_v8   ;;  %50 = vperm.xlu0 %962, %v1156_v8  }
  0x15   :  { %92 = vperm.xlu2 %964, %v1156_v8  }
  0x1c   :  { %966 = vset.pattern.permute.xlu1 %v1087_v9  ;;  %965 = vset.pattern.permute.xlu0 %v1088_v10 }
  0x1d   :  { %134 = vperm.xlu1 %966, %v1156_v8   ;;  %113 = vperm.xlu0 %965, %v1156_v8  }
  0x1e   :  { %967 = vset.pattern.permute.xlu2 %v1089_v11 }
  0x1f   :  { %155 = vperm.xlu2 %967, %v1156_v8  }
  0x25   :  { %968 = vset.pattern.permute.xlu0 %v1090_v16 }
  0x27   :  { %969 = vset.pattern.permute.xlu2 %v1091_v46 }
  0x6f   :  { %v93_v12 = vpop.permute.xlu2 %92 }
  0x70   :  { %vm94_vm3 = vcmp.eq.s32.totalorder %v1147_v3, %v93_v12 }
  0x71   :  { %v96_v22 = vsel %vm94_vm3, %v1164_v13, 0 }
  0x72   :  { %v97_v26 = vsel %vm54_vm2, %v96_v22, 0 }
  0x73   :  { %v98_v33 = vand.u32 65535, %v97_v26  ;;  %v99_v44 = vshrl.u32 %v97_v26, 16 }
  0x75   :  { %v100_v40 = vcvt.s32.f32 %v98_v33  ;;  %v101_v48 = vcvt.s32.f32 %v99_v44 }
  0x79   :  { %v156_v30 = vpop.permute.xlu2 %155 }
  0x7a   :  { %vm157_vm10 = vcmp.eq.s32.totalorder %v1147_v3, %v156_v30 }
  0x7b   :  { %v159_v47 = vsel %vm157_vm10, %v1164_v13, 0 }
  0x7c   :  { %v160_v50 = vsel %vm54_vm2, %v159_v47, 0 }
  0x7d   :  { %v161_v52 = vand.u32 65535, %v160_v50  ;;  %v162_v57 = vshrl.u32 %v160_v50, 16 }
  0x7f   :  { %v163_v54 = vcvt.s32.f32 %v161_v52  ;;  %v164_v58 = vcvt.s32.f32 %v162_v57 }
  0x86   :  { %v72_v14 = vpop.permute.xlu1 %71  ;;  %v51_v15 = vpop.permute.xlu0 %50 }
  0x87   :  { %vm73_vm4 = vcmp.eq.s32.totalorder %v1147_v3, %v72_v14  ;;  %vm52_vm5 = vcmp.eq.s32.totalorder %v1147_v3, %v51_v15 }
  0x88   :  { %v75_v17 = vsel %vm73_vm4, %v1164_v13, 0  ;;  %v53_v18 = vsel %vm52_vm5, %v1164_v13, 0  ;;  %vm74_vm6 = vmor %vm52_vm5, %vm73_vm4 }
  0x89   :  { %v76_v19 = vsel %vm54_vm2, %v75_v17, 0  ;;  %v55_v20 = vsel %vm54_vm2, %v53_v18, 0  ;;  %vm1173_vm7 = vmor %vm74_vm6, %vm94_vm3  ;;  %vm131_vm3 = vcmp.eq.s32.totalorder %v1147_v3, 3  ;;  %vm152_vm6 = vcmp.eq.s32.totalorder %v1147_v3, 4 }
  0x8a   :  { %v77_v23 = vand.u32 65535, %v76_v19  ;;  %v56_v24 = vand.u32 65535, %v55_v20  ;;  %v57_v25 = vshrl.u32 %v55_v20, 16  ;;  %v78_v34 = vshrl.u32 %v76_v19, 16 }
  0x8c   :  { %v79_v27 = vcvt.s32.f32 %v77_v23  ;;  %v58_v28 = vcvt.s32.f32 %v56_v24  ;;  %v59_v29 = vcvt.s32.f32 %v57_v25  ;;  %v80_v42 = vcvt.s32.f32 %v78_v34 }
  0x8d   :  { %v1092_v24 = vmov 8   ;;  %v1093_v25 = vmov 9  }
  0x8e   :  { %81 = vadd.xlane.f32.xlu2 %v79_v27  ;;  %60 = vadd.xlane.f32.xlu0 %v58_v28 }
  0x8f   :  { %v135_v31 = vpop.permute.xlu1 %134  ;;  %v114_v32 = vpop.permute.xlu0 %113  ;;  %62 = vadd.xlane.f32.xlu1 %v59_v29 }
  0x90   :  { %vm136_vm8 = vcmp.eq.s32.totalorder %v1147_v3, %v135_v31  ;;  %vm115_vm9 = vcmp.eq.s32.totalorder %v1147_v3, %v114_v32  ;;  %970 = vset.pattern.permute.xlu1 %v1092_v24 }
  0x91   :  { %v138_v35 = vsel %vm136_vm8, %v1164_v13, 0  ;;  %vm116_vm11 = vmor %vm1173_vm7, %vm115_vm9  ;;  %v117_v36 = vsel %vm115_vm9, %v1164_v13, 0  ;;  %vm173_vm7 = vcmp.eq.s32.totalorder %v1147_v3, 5 }
  0x92   :  { %v139_v37 = vsel %vm54_vm2, %v138_v35, 0  ;;  %vm137_vm12 = vmor %vm116_vm11, %vm136_vm8  ;;  %v118_v41 = vsel %vm54_vm2, %v117_v36, 0  ;;  %vm215_vm11 = vcmp.eq.s32.totalorder %v1147_v3, 7 }
  0x93   :  { %vm1189_vm13 = vmor %vm137_vm12, %vm157_vm10  ;;  %v141_v39 = vshrl.u32 %v139_v37, 16  ;;  %v119_v45 = vand.u32 65535, %v118_v41  ;;  %v120_v51 = vshrl.u32 %v118_v41, 16  ;;  %v140_v55 = vand.u32 65535, %v139_v37 }
  0x94   :  { %vm194_vm10 = vcmp.eq.s32.totalorder %v1147_v3, 6 }
  0x95   :  { %v143_v43 = vcvt.s32.f32 %v141_v39  ;;  %v121_v49 = vcvt.s32.f32 %v119_v45  ;;  %v122_v53 = vcvt.s32.f32 %v120_v51  ;;  %v142_v56 = vcvt.s32.f32 %v140_v55 }
  0x96   :  { %83 = vadd.xlane.f32.xlu2 %v80_v42 }
  0x97   :  { %146 = vadd.xlane.f32.xlu0 %v143_v43  ;;  %102 = vadd.xlane.f32.xlu1 %v100_v40 }
  0x9e   :  { %104 = vadd.xlane.f32.xlu2 %v101_v48 }
  0x9f   :  { %123 = vadd.xlane.f32.xlu1 %v121_v49 }
  0xa6   :  { %125 = vadd.xlane.f32.xlu2 %v122_v53 }
  0xa7   :  { %165 = vadd.xlane.f32.xlu1 %v163_v54 }
  0xab   :  { %176 = vperm.xlu0 %968, %v1156_v8  }
  0xae   :  { %144 = vadd.xlane.f32.xlu2 %v142_v56 }
  0xb3   :  { %971 = vset.pattern.permute.xlu0 %v1093_v25 }
  0xb6   :  { %167 = vadd.xlane.f32.xlu2 %v164_v58 }
  0xce   :  { %197 = vperm.xlu2 %969, %v1156_v8  }
 0x101   :  { %v82_v59 = vpop.xlane.xlu2 %81  ;;  %v61_v60 = vpop.xlane.xlu0 %60 }
 0x102   :  { %v63_v61 = vpop.xlane.xlu1 %62  ;;  %v64_v63 = vcvt.f32.s32 %v61_v60  ;;  %v85_v5 = vcvt.f32.s32 %v82_v59 }
 0x103   :  { %v65_v62 = vcvt.f32.s32 %v63_v61 }
 0x105   :  { %v66_v0 = vshll.u32 %v65_v62, 16 }
 0x107   :  { %v67_v1 = vadd.s32 %v66_v0, %v64_v63 }
 0x109   :  { %v84_v2 = vpop.xlane.xlu2 %83  ;;  %v69_v10 = vsel %vm68_vm14, %v67_v1, 0 }
 0x10a   :  { %v86_v4 = vcvt.f32.s32 %v84_v2  ;;  %v103_v11 = vpop.xlane.xlu1 %102  ;;  %v147_v18 = vpop.xlane.xlu0 %146 }
 0x10b   :  { %v106_v17 = vcvt.f32.s32 %v103_v11  ;;  %v149_v29 = vcvt.f32.s32 %v147_v18 }
 0x10c   :  { %v87_v7 = vshll.u32 %v86_v4, 16 }
 0x10d   :  { %v150_v37 = vshll.u32 %v149_v29, 16 }
 0x10e   :  { %v88_v9 = vadd.s32 %v87_v7, %v85_v5 }
 0x110   :  { %v90_v12 = vsel %vm89_vm15, %v88_v9, %v69_v10 }
 0x111   :  { %v105_v14 = vpop.xlane.xlu2 %104 }
 0x112   :  { %v107_v15 = vcvt.f32.s32 %v105_v14  ;;  %v124_v22 = vpop.xlane.xlu1 %123  ;;  %v1095_v14 = vmov 11  }
 0x113   :  { %v127_v27 = vcvt.f32.s32 %v124_v22 }
 0x114   :  { %v108_v16 = vshll.u32 %v107_v15, 16 }
 0x116   :  { %v109_v19 = vadd.s32 %v108_v16, %v106_v17 }
 0x118   :  { %v111_v20 = vsel %vm110_vm0, %v109_v19, %v90_v12  ;;  %v1094_v12 = vmov 10  }
 0x119   :  { %v126_v21 = vpop.xlane.xlu2 %125 }
 0x11a   :  { %v128_v23 = vcvt.f32.s32 %v126_v21  ;;  %v166_v44 = vpop.xlane.xlu1 %165 }
 0x11b   :  { %v169_v48 = vcvt.f32.s32 %v166_v44 }
 0x11c   :  { %v129_v26 = vshll.u32 %v128_v23, 16 }
 0x11d   :  { %v177_v28 = vpop.permute.xlu0 %176 }
 0x11e   :  { %v130_v30 = vadd.s32 %v129_v26, %v127_v27  ;;  %vm178_vm4 = vcmp.eq.s32.totalorder %v1147_v3, %v177_v28 }
 0x11f   :  { %vm1207_vm5 = vmor %vm1189_vm13, %vm178_vm4  ;;  %v180_v32 = vsel %vm178_vm4, %v1164_v13, 0  ;;  %vm257_vm4 = vcmp.eq.s32.totalorder %v1147_v3, 9 }
 0x120   :  { %v132_v33 = vsel %vm131_vm3, %v130_v30, %v111_v20  ;;  %v181_v34 = vsel %vm54_vm2, %v180_v32, 0  ;;  %vm236_vm3 = vcmp.eq.s32.totalorder %v1147_v3, 8 }
 0x121   :  { %v145_v35 = vpop.xlane.xlu2 %144  ;;  %v182_v36 = vand.u32 65535, %v181_v34  ;;  %v183_v38 = vshrl.u32 %v181_v34, 16 }
 0x122   :  { %v148_v39 = vcvt.f32.s32 %v145_v35 }
 0x123   :  { %v184_v40 = vcvt.s32.f32 %v182_v36  ;;  %v185_v46 = vcvt.s32.f32 %v183_v38 }
 0x124   :  { %v151_v41 = vadd.s32 %v150_v37, %v148_v39 }
 0x125   :  { %186 = vadd.xlane.f32.xlu1 %v184_v40 }
 0x126   :  { %v153_v42 = vsel %vm152_vm6, %v151_v41, %v132_v33 }
 0x129   :  { %v168_v43 = vpop.xlane.xlu2 %167 }
 0x12a   :  { %v170_v45 = vcvt.f32.s32 %v168_v43 }
 0x12c   :  { %v171_v47 = vshll.u32 %v170_v45, 16 }
 0x12d   :  { %188 = vadd.xlane.f32.xlu1 %v185_v46  ;;  %v1096_v46 = vmov 13  }
 0x12e   :  { %v172_v49 = vadd.s32 %v171_v47, %v169_v48  ;;  %v1097_v47 = vmov 12  }
 0x12f   :  { %974 = vset.pattern.permute.xlu2 %v1097_v47 }
 0x130   :  { %v174_v50 = vsel %vm173_vm7, %v172_v49, %v153_v42 }
 0x131   :  { %v198_v51 = vpop.permute.xlu2 %197 }
 0x132   :  { %vm199_vm8 = vcmp.eq.s32.totalorder %v1147_v3, %v198_v51 }
 0x133   :  { %vm1218_vm9 = vmor %vm1207_vm5, %vm199_vm8  ;;  %v201_v53 = vsel %vm199_vm8, %v1164_v13, 0  ;;  %vm278_vm8 = vcmp.eq.s32.totalorder %v1147_v3, 10 }
 0x134   :  { %v202_v54 = vsel %vm54_vm2, %v201_v53, 0 }
 0x135   :  { %v204_v55 = vshrl.u32 %v202_v54, 16  ;;  %v203_v56 = vand.u32 65535, %v202_v54 }
 0x137   :  { %v206_v57 = vcvt.s32.f32 %v204_v55  ;;  %v205_v58 = vcvt.s32.f32 %v203_v56 }
 0x139   :  { %209 = vadd.xlane.f32.xlu0 %v206_v57  ;;  %207 = vadd.xlane.f32.xlu1 %v205_v58 }
 0x14d   :  { %239 = vperm.xlu0 %971, %v1156_v8  }
 0x152   :  { %218 = vperm.xlu1 %970, %v1156_v8  }
 0x155   :  { %973 = vset.pattern.permute.xlu0 %v1095_v14 }
 0x156   :  { %281 = vperm.xlu0 %973, %v1156_v8  }
 0x15a   :  { %972 = vset.pattern.permute.xlu1 %v1094_v12  ;;  %v1098_v12 = vmov 14  }
 0x15e   :  { %976 = vset.pattern.permute.xlu0 %v1098_v12 }
 0x198   :  { %v187_v59 = vpop.xlane.xlu1 %186 }
 0x199   :  { %v190_v62 = vcvt.f32.s32 %v187_v59 }
 0x1a0   :  { %v189_v60 = vpop.xlane.xlu1 %188 }
 0x1a1   :  { %v191_v61 = vcvt.f32.s32 %v189_v60 }
 0x1a3   :  { %v192_v63 = vshll.u32 %v191_v61, 16 }
 0x1a5   :  { %v193_v0 = vadd.s32 %v192_v63, %v190_v62 }
 0x1a7   :  { %v195_v1 = vsel %vm194_vm10, %v193_v0, %v174_v50 }
 0x1ac   :  { %v208_v2 = vpop.xlane.xlu1 %207  ;;  %v210_v4 = vpop.xlane.xlu0 %209 }
 0x1ad   :  { %v212_v5 = vcvt.f32.s32 %v210_v4  ;;  %v211_v7 = vcvt.f32.s32 %v208_v2 }
 0x1af   :  { %v213_v9 = vshll.u32 %v212_v5, 16 }
 0x1b1   :  { %v214_v10 = vadd.s32 %v213_v9, %v211_v7 }
 0x1b3   :  { %v216_v11 = vsel %vm215_vm11, %v214_v10, %v195_v1 }
 0x1bf   :  { %v240_v15 = vpop.permute.xlu0 %239 }
 0x1c0   :  { %vm241_vm12 = vcmp.eq.s32.totalorder %v1147_v3, %v240_v15 }
 0x1c1   :  { %v243_v18 = vsel %vm241_vm12, %v1164_v13, 0 }
 0x1c2   :  { %v244_v23 = vsel %vm54_vm2, %v243_v18, 0 }
 0x1c3   :  { %v245_v26 = vand.u32 65535, %v244_v23  ;;  %v246_v28 = vshrl.u32 %v244_v23, 16 }
 0x1c4   :  { %v219_v16 = vpop.permute.xlu1 %218 }
 0x1c5   :  { %vm220_vm13 = vcmp.eq.s32.totalorder %v1147_v3, %v219_v16  ;;  %v247_v27 = vcvt.s32.f32 %v245_v26  ;;  %v248_v29 = vcvt.s32.f32 %v246_v28 }
 0x1c6   :  { %vm221_vm14 = vmor %vm1218_vm9, %vm220_vm13  ;;  %v222_v17 = vsel %vm220_vm13, %v1164_v13, 0  ;;  %vm299_vm9 = vcmp.eq.s32.totalorder %v1147_v3, 11 }
 0x1c7   :  { %v223_v19 = vsel %vm54_vm2, %v222_v17, 0  ;;  %vm1236_vm15 = vmor %vm221_vm14, %vm241_vm12  ;;  %vm320_vm14 = vcmp.eq.s32.totalorder %v1147_v3, 12 }
 0x1c8   :  { %v225_v21 = vshrl.u32 %v223_v19, 16  ;;  %v224_v22 = vand.u32 65535, %v223_v19  ;;  %v282_v30 = vpop.permute.xlu0 %281 }
 0x1c9   :  { %vm283_vm0 = vcmp.eq.s32.totalorder %v1147_v3, %v282_v30 }
 0x1ca   :  { %v227_v24 = vcvt.s32.f32 %v225_v21  ;;  %v226_v25 = vcvt.s32.f32 %v224_v22  ;;  %v285_v31 = vsel %vm283_vm0, %v1164_v13, 0 }
 0x1cb   :  { %v286_v32 = vsel %vm54_vm2, %v285_v31, 0 }
 0x1cc   :  { %230 = vadd.xlane.f32.xlu1 %v227_v24  ;;  %228 = vadd.xlane.f32.xlu2 %v226_v25  ;;  %v288_v33 = vshrl.u32 %v286_v32, 16  ;;  %v287_v59 = vand.u32 65535, %v286_v32 }
 0x1ce   :  { %v290_v34 = vcvt.s32.f32 %v288_v33  ;;  %v289_v60 = vcvt.s32.f32 %v287_v59 }
 0x1d4   :  { %249 = vadd.xlane.f32.xlu2 %v247_v27 }
 0x1dc   :  { %251 = vadd.xlane.f32.xlu2 %v248_v29 }
 0x1e5   :  { %260 = vperm.xlu1 %972, %v1156_v8  }
 0x1ed   :  { %975 = vset.pattern.permute.xlu1 %v1096_v46 }
 0x20f   :  { %293 = vadd.xlane.f32.xlu1 %v290_v34 }
 0x228   :  { %323 = vperm.xlu1 %975, %v1156_v8  }
 0x23f   :  { %v231_v35 = vpop.xlane.xlu1 %230  ;;  %v229_v36 = vpop.xlane.xlu2 %228 }
 0x240   :  { %v233_v37 = vcvt.f32.s32 %v231_v35  ;;  %v232_v40 = vcvt.f32.s32 %v229_v36 }
 0x242   :  { %v234_v39 = vshll.u32 %v233_v37, 16 }
 0x244   :  { %v235_v41 = vadd.s32 %v234_v39, %v232_v40  ;;  %v1099_v40 = vmov 16  }
 0x245   :  { %978 = vset.pattern.permute.xlu1 %v1099_v40 }
 0x246   :  { %v237_v42 = vsel %vm236_vm3, %v235_v41, %v216_v11 }
 0x247   :  { %v250_v38 = vpop.xlane.xlu2 %249 }
 0x248   :  { %v253_v44 = vcvt.f32.s32 %v250_v38 }
 0x24f   :  { %v252_v43 = vpop.xlane.xlu2 %251 }
 0x250   :  { %v254_v45 = vcvt.f32.s32 %v252_v43 }
 0x252   :  { %v255_v48 = vshll.u32 %v254_v45, 16 }
 0x254   :  { %v256_v49 = vadd.s32 %v255_v48, %v253_v44 }
 0x256   :  { %v258_v50 = vsel %vm257_vm4, %v256_v49, %v237_v42  ;;  %v1100_v49 = vmov 15   ;;  %vm362_vm4 = vcmp.eq.s32.totalorder %v1147_v3, 14 }
 0x257   :  { %v261_v51 = vpop.permute.xlu1 %260 }
 0x258   :  { %vm262_vm5 = vcmp.eq.s32.totalorder %v1147_v3, %v261_v51 }
 0x259   :  { %vm263_vm6 = vmor %vm1236_vm15, %vm262_vm5  ;;  %v264_v52 = vsel %vm262_vm5, %v1164_v13, 0  ;;  %vm341_vm15 = vcmp.eq.s32.totalorder %v1147_v3, 13 }
 0x25a   :  { %v265_v53 = vsel %vm54_vm2, %v264_v52, 0  ;;  %vm1257_vm7 = vmor %vm263_vm6, %vm283_vm0 }
 0x25b   :  { %v266_v55 = vand.u32 65535, %v265_v53  ;;  %v267_v57 = vshrl.u32 %v265_v53, 16 }
 0x25d   :  { %v268_v56 = vcvt.s32.f32 %v266_v55  ;;  %v269_v58 = vcvt.s32.f32 %v267_v57 }
 0x25f   :  { %270 = vadd.xlane.f32.xlu2 %v268_v56 }
 0x267   :  { %272 = vadd.xlane.f32.xlu2 %v269_v58  ;;  %v1101_v58 = vmov 17  }
 0x26f   :  { %291 = vadd.xlane.f32.xlu2 %v289_v60 }
 0x282   :  { %v294_v0 = vpop.xlane.xlu1 %293 }
 0x283   :  { %v296_v5 = vcvt.f32.s32 %v294_v0 }
 0x285   :  { %v297_v10 = vshll.u32 %v296_v5, 16 }
 0x287   :  { %302 = vperm.xlu2 %974, %v1156_v8  }
 0x28f   :  { %977 = vset.pattern.permute.xlu2 %v1100_v49 }
 0x29a   :  { %v324_v16 = vpop.permute.xlu1 %323 }
 0x29b   :  { %vm325_vm10 = vcmp.eq.s32.totalorder %v1147_v3, %v324_v16 }
 0x29c   :  { %v327_v19 = vsel %vm325_vm10, %v1164_v13, 0 }
 0x29d   :  { %v328_v24 = vsel %vm54_vm2, %v327_v19, 0 }
 0x29e   :  { %v329_v27 = vand.u32 65535, %v328_v24  ;;  %v330_v29 = vshrl.u32 %v328_v24, 16 }
 0x2a0   :  { %v331_v28 = vcvt.s32.f32 %v329_v27  ;;  %v332_v30 = vcvt.s32.f32 %v330_v29 }
 0x2d2   :  { %v271_v61 = vpop.xlane.xlu2 %270 }
 0x2d3   :  { %v274_v1 = vcvt.f32.s32 %v271_v61 }
 0x2da   :  { %v273_v62 = vpop.xlane.xlu2 %272 }
 0x2db   :  { %v275_v63 = vcvt.f32.s32 %v273_v62 }
 0x2dd   :  { %v276_v2 = vshll.u32 %v275_v63, 16 }
 0x2df   :  { %v277_v4 = vadd.s32 %v276_v2, %v274_v1 }
 0x2e1   :  { %v279_v7 = vsel %vm278_vm8, %v277_v4, %v258_v50 }
 0x2e2   :  { %v292_v9 = vpop.xlane.xlu2 %291 }
 0x2e3   :  { %v295_v11 = vcvt.f32.s32 %v292_v9 }
 0x2e5   :  { %v298_v14 = vadd.s32 %v297_v10, %v295_v11 }
 0x2e7   :  { %v300_v15 = vsel %vm299_vm9, %v298_v14, %v279_v7  ;;  %vm383_vm9 = vcmp.eq.s32.totalorder %v1147_v3, 15 }
 0x2ea   :  { %v303_v17 = vpop.permute.xlu2 %302 }
 0x2eb   :  { %vm304_vm11 = vcmp.eq.s32.totalorder %v1147_v3, %v303_v17 }
 0x2ec   :  { %vm305_vm12 = vmor %vm1257_vm7, %vm304_vm11  ;;  %v306_v18 = vsel %vm304_vm11, %v1164_v13, 0 }
 0x2ed   :  { %v307_v20 = vsel %vm54_vm2, %v306_v18, 0  ;;  %vm1271_vm13 = vmor %vm305_vm12, %vm325_vm10  ;;  %vm404_vm12 = vcmp.eq.s32.totalorder %v1147_v3, 16 }
 0x2ee   :  { %v309_v22 = vshrl.u32 %v307_v20, 16  ;;  %v308_v23 = vand.u32 65535, %v307_v20 }
 0x2f0   :  { %v311_v25 = vcvt.s32.f32 %v309_v22  ;;  %v310_v26 = vcvt.s32.f32 %v308_v23  ;;  %v1102_v23 = vmov 18  }
 0x2f2   :  { %314 = vadd.xlane.f32.xlu2 %v311_v25  ;;  %312 = vadd.xlane.f32.xlu0 %v310_v26 }
 0x2fa   :  { %333 = vadd.xlane.f32.xlu0 %v331_v28 }
 0x302   :  { %335 = vadd.xlane.f32.xlu0 %v332_v30 }
 0x316   :  { %344 = vperm.xlu0 %976, %v1156_v8  }
 0x31e   :  { %979 = vset.pattern.permute.xlu0 %v1101_v58 }
 0x365   :  { %v315_v31 = vpop.xlane.xlu2 %314  ;;  %v313_v32 = vpop.xlane.xlu0 %312 }
 0x366   :  { %v317_v33 = vcvt.f32.s32 %v315_v31  ;;  %v316_v35 = vcvt.f32.s32 %v313_v32 }
 0x368   :  { %v318_v34 = vshll.u32 %v317_v33, 16 }
 0x36a   :  { %v319_v36 = vadd.s32 %v318_v34, %v316_v35  ;;  %v1103_v35 = vmov 19  }
 0x36c   :  { %v321_v37 = vsel %vm320_vm14, %v319_v36, %v300_v15  ;;  %v1104_v36 = vmov 20  }
 0x36d   :  { %v334_v39 = vpop.xlane.xlu0 %333 }
 0x36e   :  { %v337_v38 = vcvt.f32.s32 %v334_v39 }
 0x375   :  { %v336_v41 = vpop.xlane.xlu0 %335 }
 0x376   :  { %v338_v42 = vcvt.f32.s32 %v336_v41 }
 0x378   :  { %v339_v43 = vshll.u32 %v338_v42, 16 }
 0x37a   :  { %v340_v44 = vadd.s32 %v339_v43, %v337_v38 }
 0x37c   :  { %v342_v45 = vsel %vm341_vm15, %v340_v44, %v321_v37 }
 0x388   :  { %v345_v46 = vpop.permute.xlu0 %344 }
 0x389   :  { %vm346_vm0 = vcmp.eq.s32.totalorder %v1147_v3, %v345_v46 }
 0x38a   :  { %vm1282_vm3 = vmor %vm1271_vm13, %vm346_vm0  ;;  %v348_v48 = vsel %vm346_vm0, %v1164_v13, 0  ;;  %vm425_vm13 = vcmp.eq.s32.totalorder %v1147_v3, 17  ;;  %vm446_vm0 = vcmp.eq.s32.totalorder %v1147_v3, 18 }
 0x38b   :  { %v349_v50 = vsel %vm54_vm2, %v348_v48, 0 }
 0x38c   :  { %v351_v51 = vshrl.u32 %v349_v50, 16  ;;  %v350_v52 = vand.u32 65535, %v349_v50 }
 0x38e   :  { %v353_v53 = vcvt.s32.f32 %v351_v51  ;;  %v352_v54 = vcvt.s32.f32 %v350_v52  ;;  %v1108_v51 = vmov 24  }
 0x390   :  { %356 = vadd.xlane.f32.xlu1 %v353_v53  ;;  %354 = vadd.xlane.f32.xlu2 %v352_v54 }
 0x3a8   :  { %365 = vperm.xlu2 %977, %v1156_v8  }
 0x3a9   :  { %386 = vperm.xlu1 %978, %v1156_v8  }
 0x3b0   :  { %980 = vset.pattern.permute.xlu2 %v1102_v23 }
 0x3b1   :  { %981 = vset.pattern.permute.xlu1 %v1103_v35 }
 0x403   :  { %v357_v55 = vpop.xlane.xlu1 %356  ;;  %v355_v56 = vpop.xlane.xlu2 %354 }
 0x404   :  { %v359_v57 = vcvt.f32.s32 %v357_v55  ;;  %v358_v60 = vcvt.f32.s32 %v355_v56 }
 0x406   :  { %v360_v59 = vshll.u32 %v359_v57, 16 }
 0x408   :  { %v361_v61 = vadd.s32 %v360_v59, %v358_v60 }
 0x40a   :  { %v363_v62 = vsel %vm362_vm4, %v361_v61, %v342_v45 }
 0x40b   :  { %v366_v63 = vpop.permute.xlu2 %365 }
 0x40c   :  { %vm367_vm5 = vcmp.eq.s32.totalorder %v1147_v3, %v366_v63 }
 0x40d   :  { %vm368_vm6 = vmor %vm1282_vm3, %vm367_vm5  ;;  %v369_v0 = vsel %vm367_vm5, %v1164_v13, 0 }
 0x40e   :  { %v370_v1 = vsel %vm54_vm2, %v369_v0, 0 }
 0x40f   :  { %v372_v2 = vshrl.u32 %v370_v1, 16  ;;  %v371_v4 = vand.u32 65535, %v370_v1  ;;  %v1105_v1 = vmov 22  }
 0x411   :  { %v374_v5 = vcvt.s32.f32 %v372_v2  ;;  %v373_v7 = vcvt.s32.f32 %v371_v4  ;;  %v1106_v2 = vmov 21  }
 0x413   :  { %377 = vadd.xlane.f32.xlu0 %v374_v5  ;;  %375 = vadd.xlane.f32.xlu2 %v373_v7 }
 0x41b   :  { %v387_v9 = vpop.permute.xlu1 %386 }
 0x41c   :  { %vm388_vm7 = vcmp.eq.s32.totalorder %v1147_v3, %v387_v9 }
 0x41d   :  { %vm1297_vm8 = vmor %vm368_vm6, %vm388_vm7  ;;  %v390_v11 = vsel %vm388_vm7, %v1164_v13, 0 }
 0x41e   :  { %v391_v12 = vsel %vm54_vm2, %v390_v11, 0 }
 0x41f   :  { %v393_v14 = vshrl.u32 %v391_v12, 16  ;;  %v392_v15 = vand.u32 65535, %v391_v12 }
 0x421   :  { %v395_v16 = vcvt.s32.f32 %v393_v14  ;;  %v394_v17 = vcvt.s32.f32 %v392_v15 }
 0x423   :  { %398 = vadd.xlane.f32.xlu2 %v395_v16  ;;  %396 = vadd.xlane.f32.xlu1 %v394_v17 }
 0x427   :  { %407 = vperm.xlu0 %979, %v1156_v8  }
 0x42f   :  { %982 = vset.pattern.permute.xlu0 %v1104_v36 }
 0x486   :  { %v378_v18 = vpop.xlane.xlu0 %377  ;;  %v376_v19 = vpop.xlane.xlu2 %375 }
 0x487   :  { %v380_v20 = vcvt.f32.s32 %v378_v18  ;;  %v379_v22 = vcvt.f32.s32 %v376_v19 }
 0x489   :  { %v381_v21 = vshll.u32 %v380_v20, 16 }
 0x48b   :  { %v382_v24 = vadd.s32 %v381_v21, %v379_v22 }
 0x48d   :  { %v384_v25 = vsel %vm383_vm9, %v382_v24, %v363_v62  ;;  %vm488_vm9 = vcmp.eq.s32.totalorder %v1147_v3, 20 }
 0x496   :  { %v399_v34 = vpop.xlane.xlu2 %398  ;;  %v397_v40 = vpop.xlane.xlu1 %396 }
 0x497   :  { %v401_v39 = vcvt.f32.s32 %v399_v34  ;;  %v400_v42 = vcvt.f32.s32 %v397_v40 }
 0x499   :  { %v408_v26 = vpop.permute.xlu0 %407  ;;  %v402_v41 = vshll.u32 %v401_v39, 16 }
 0x49a   :  { %vm409_vm10 = vcmp.eq.s32.totalorder %v1147_v3, %v408_v26 }
 0x49b   :  { %vm1308_vm11 = vmor %vm1297_vm8, %vm409_vm10  ;;  %v411_v28 = vsel %vm409_vm10, %v1164_v13, 0  ;;  %v403_v44 = vadd.s32 %v402_v41, %v400_v42  ;;  %vm467_vm8 = vcmp.eq.s32.totalorder %v1147_v3, 19 }
 0x49c   :  { %v412_v29 = vsel %vm54_vm2, %v411_v28, 0 }
 0x49d   :  { %v413_v30 = vand.u32 65535, %v412_v29  ;;  %v414_v32 = vshrl.u32 %v412_v29, 16  ;;  %v405_v48 = vsel %vm404_vm12, %v403_v44, %v384_v25 }
 0x49f   :  { %v415_v31 = vcvt.s32.f32 %v413_v30  ;;  %v416_v33 = vcvt.s32.f32 %v414_v32 }
 0x4a1   :  { %417 = vadd.xlane.f32.xlu2 %v415_v31 }
 0x4a9   :  { %419 = vadd.xlane.f32.xlu2 %v416_v33 }
 0x4c1   :  { %428 = vperm.xlu2 %980, %v1156_v8  }
 0x4c9   :  { %983 = vset.pattern.permute.xlu2 %v1106_v2 }
 0x514   :  { %v418_v37 = vpop.xlane.xlu2 %417 }
 0x515   :  { %v421_v45 = vcvt.f32.s32 %v418_v37  ;;  %v1107_v37 = vmov 23  }
 0x51c   :  { %v420_v38 = vpop.xlane.xlu2 %419 }
 0x51d   :  { %v422_v43 = vcvt.f32.s32 %v420_v38 }
 0x51f   :  { %v423_v46 = vshll.u32 %v422_v43, 16 }
 0x521   :  { %v424_v47 = vadd.s32 %v423_v46, %v421_v45 }
 0x523   :  { %v426_v49 = vsel %vm425_vm13, %v424_v47, %v405_v48  ;;  %vm509_vm13 = vcmp.eq.s32.totalorder %v1147_v3, 21 }
 0x524   :  { %v429_v50 = vpop.permute.xlu2 %428 }
 0x525   :  { %vm430_vm14 = vcmp.eq.s32.totalorder %v1147_v3, %v429_v50 }
 0x526   :  { %vm1320_vm15 = vmor %vm1308_vm11, %vm430_vm14  ;;  %v432_v52 = vsel %vm430_vm14, %v1164_v13, 0  ;;  %vm530_vm14 = vcmp.eq.s32.totalorder %v1147_v3, 22 }
 0x527   :  { %v433_v53 = vsel %vm54_vm2, %v432_v52, 0 }
 0x528   :  { %v435_v54 = vshrl.u32 %v433_v53, 16  ;;  %v434_v55 = vand.u32 65535, %v433_v53  ;;  %v1109_v53 = vmov 25  }
 0x52a   :  { %v437_v56 = vcvt.s32.f32 %v435_v54  ;;  %v436_v57 = vcvt.s32.f32 %v434_v55 }
 0x52c   :  { %440 = vadd.xlane.f32.xlu0 %v437_v56  ;;  %438 = vadd.xlane.f32.xlu1 %v436_v57 }
 0x540   :  { %470 = vperm.xlu0 %982, %v1156_v8  }
 0x545   :  { %449 = vperm.xlu1 %981, %v1156_v8  }
 0x548   :  { %984 = vset.pattern.permute.xlu0 %v1105_v1 }
 0x549   :  { %512 = vperm.xlu0 %984, %v1156_v8  }
 0x54d   :  { %985 = vset.pattern.permute.xlu1 %v1107_v37 }
 0x59f   :  { %v441_v58 = vpop.xlane.xlu0 %440  ;;  %v439_v59 = vpop.xlane.xlu1 %438 }
 0x5a0   :  { %v443_v60 = vcvt.f32.s32 %v441_v58  ;;  %v442_v62 = vcvt.f32.s32 %v439_v59 }
 0x5a2   :  { %v444_v61 = vshll.u32 %v443_v60, 16 }
 0x5a4   :  { %v445_v63 = vadd.s32 %v444_v61, %v442_v62 }
 0x5a6   :  { %v447_v0 = vsel %vm446_vm0, %v445_v63, %v426_v49 }
 0x5b2   :  { %v471_v4 = vpop.permute.xlu0 %470 }
 0x5b3   :  { %vm472_vm3 = vcmp.eq.s32.totalorder %v1147_v3, %v471_v4 }
 0x5b4   :  { %v474_v9 = vsel %vm472_vm3, %v1164_v13, 0 }
 0x5b5   :  { %v475_v15 = vsel %vm54_vm2, %v474_v9, 0 }
 0x5b6   :  { %v476_v18 = vand.u32 65535, %v475_v15  ;;  %v477_v20 = vshrl.u32 %v475_v15, 16 }
 0x5b7   :  { %v450_v5 = vpop.permute.xlu1 %449 }
 0x5b8   :  { %vm451_vm4 = vcmp.eq.s32.totalorder %v1147_v3, %v450_v5  ;;  %v478_v19 = vcvt.s32.f32 %v476_v18  ;;  %v479_v21 = vcvt.s32.f32 %v477_v20 }
 0x5b9   :  { %vm452_vm5 = vmor %vm1320_vm15, %vm451_vm4  ;;  %v453_v7 = vsel %vm451_vm4, %v1164_v13, 0 }
 0x5ba   :  { %v454_v10 = vsel %vm54_vm2, %v453_v7, 0  ;;  %vm1337_vm6 = vmor %vm452_vm5, %vm472_vm3 }
 0x5bb   :  { %v456_v12 = vshrl.u32 %v454_v10, 16  ;;  %v455_v14 = vand.u32 65535, %v454_v10  ;;  %v513_v22 = vpop.permute.xlu0 %512 }
 0x5bc   :  { %vm514_vm7 = vcmp.eq.s32.totalorder %v1147_v3, %v513_v22 }
 0x5bd   :  { %v458_v16 = vcvt.s32.f32 %v456_v12  ;;  %v457_v17 = vcvt.s32.f32 %v455_v14  ;;  %v516_v26 = vsel %vm514_vm7, %v1164_v13, 0  ;;  %v1110_v12 = vmov 26  }
 0x5be   :  { %v517_v30 = vsel %vm54_vm2, %v516_v26, 0 }
 0x5bf   :  { %461 = vadd.xlane.f32.xlu1 %v458_v16  ;;  %459 = vadd.xlane.f32.xlu2 %v457_v17  ;;  %v519_v33 = vshrl.u32 %v517_v30, 16  ;;  %v518_v50 = vand.u32 65535, %v517_v30  ;;  %v1376_v17 = vld [vmem:[#allocation2] sm:$0x3] }
 0x5c1   :  { %v521_v34 = vcvt.s32.f32 %v519_v33  ;;  %v520_v52 = vcvt.s32.f32 %v518_v50 }
 0x5c7   :  { %480 = vadd.xlane.f32.xlu2 %v478_v19 }
 0x5cf   :  { %482 = vadd.xlane.f32.xlu2 %v479_v21 }
 0x5e7   :  { %491 = vperm.xlu2 %983, %v1156_v8  }
 0x5ef   :  { %986 = vset.pattern.permute.xlu2 %v1108_v51 }
 0x610   :  { %524 = vadd.xlane.f32.xlu2 %v521_v34 }
 0x628   :  { %554 = vperm.xlu2 %986, %v1156_v8  }
 0x630   :  { %987 = vset.pattern.permute.xlu2 %v1109_v53 }
 0x631   :  { %575 = vperm.xlu2 %987, %v1156_v8  }
 0x632   :  { %v462_v23 = vpop.xlane.xlu1 %461  ;;  %v460_v24 = vpop.xlane.xlu2 %459 }
 0x633   :  { %v464_v25 = vcvt.f32.s32 %v462_v23  ;;  %v463_v28 = vcvt.f32.s32 %v460_v24 }
 0x635   :  { %v465_v27 = vshll.u32 %v464_v25, 16 }
 0x637   :  { %v466_v29 = vadd.s32 %v465_v27, %v463_v28 }
 0x639   :  { %v468_v31 = vsel %vm467_vm8, %v466_v29, %v447_v0  ;;  %vm572_vm8 = vcmp.eq.s32.totalorder %v1147_v3, 24 }
 0x63a   :  { %v481_v32 = vpop.xlane.xlu2 %480 }
 0x63b   :  { %v484_v39 = vcvt.f32.s32 %v481_v32 }
 0x642   :  { %v483_v35 = vpop.xlane.xlu2 %482 }
 0x643   :  { %v485_v36 = vcvt.f32.s32 %v483_v35 }
 0x645   :  { %v486_v40 = vshll.u32 %v485_v36, 16 }
 0x647   :  { %v487_v41 = vadd.s32 %v486_v40, %v484_v39  ;;  %v1111_v40 = vmov 27  }
 0x648   :  { %989 = vset.pattern.permute.xlu0 %v1111_v40 }
 0x649   :  { %v489_v42 = vsel %vm488_vm9, %v487_v41, %v468_v31 }
 0x64a   :  { %v492_v38 = vpop.permute.xlu2 %491 }
 0x64b   :  { %vm493_vm10 = vcmp.eq.s32.totalorder %v1147_v3, %v492_v38 }
 0x64c   :  { %vm494_vm11 = vmor %vm1337_vm6, %vm493_vm10  ;;  %v495_v43 = vsel %vm493_vm10, %v1164_v13, 0 }
 0x64d   :  { %v496_v44 = vsel %vm54_vm2, %v495_v43, 0  ;;  %vm1357_vm12 = vmor %vm494_vm11, %vm514_vm7  ;;  %vm551_vm7 = vcmp.eq.s32.totalorder %v1147_v3, 23  ;;  %vm593_vm11 = vcmp.eq.s32.totalorder %v1147_v3, 25 }
 0x64e   :  { %v497_v46 = vand.u32 65535, %v496_v44  ;;  %v498_v48 = vshrl.u32 %v496_v44, 16 }
 0x650   :  { %v499_v47 = vcvt.s32.f32 %v497_v46  ;;  %v500_v49 = vcvt.s32.f32 %v498_v48 }
 0x652   :  { %501 = vadd.xlane.f32.xlu1 %v499_v47 }
 0x65a   :  { %503 = vadd.xlane.f32.xlu1 %v500_v49 }
 0x662   :  { %522 = vadd.xlane.f32.xlu1 %v520_v52 }
 0x67b   :  { %533 = vperm.xlu1 %985, %v1156_v8  }
 0x683   :  { %v525_v55 = vpop.xlane.xlu2 %524  ;;  %988 = vset.pattern.permute.xlu1 %v1110_v12 }
 0x684   :  { %v527_v60 = vcvt.f32.s32 %v525_v55 }
 0x686   :  { %v528_v0 = vshll.u32 %v527_v60, 16 }
 0x68b   :  { %v555_v61 = vpop.permute.xlu2 %554 }
 0x68c   :  { %vm556_vm0 = vcmp.eq.s32.totalorder %v1147_v3, %v555_v61 }
 0x68d   :  { %v558_v16 = vsel %vm556_vm0, %v1164_v13, 0 }
 0x693   :  { %v576_v7 = vpop.permute.xlu2 %575 }
 0x694   :  { %vm577_vm15 = vcmp.eq.s32.totalorder %v1147_v3, %v576_v7 }
 0x695   :  { %v579_v9 = vsel %vm577_vm15, %v1164_v13, 0  ;;  %v559_v13 = vsel %vm54_vm2, %v558_v16, 0 }
 0x696   :  { %v580_v10 = vsel %vm54_vm2, %v579_v9, 0  ;;  %v560_v25 = vand.u32 65535, %v559_v13  ;;  %v561_v27 = vshrl.u32 %v559_v13, 16 }
 0x697   :  { %v582_v11 = vshrl.u32 %v580_v10, 16  ;;  %v581_v29 = vand.u32 65535, %v580_v10 }
 0x698   :  { %v562_v26 = vcvt.s32.f32 %v560_v25  ;;  %v563_v28 = vcvt.s32.f32 %v561_v27 }
 0x699   :  { %v584_v14 = vcvt.s32.f32 %v582_v11  ;;  %v583_v30 = vcvt.s32.f32 %v581_v29 }
 0x69b   :  { %587 = vadd.xlane.f32.xlu2 %v584_v14 }
 0x6c5   :  { %v502_v54 = vpop.xlane.xlu1 %501 }
 0x6c6   :  { %v505_v58 = vcvt.f32.s32 %v502_v54 }
 0x6cd   :  { %v504_v56 = vpop.xlane.xlu1 %503 }
 0x6ce   :  { %v506_v57 = vcvt.f32.s32 %v504_v56 }
 0x6d0   :  { %v507_v59 = vshll.u32 %v506_v57, 16 }
 0x6d2   :  { %v508_v62 = vadd.s32 %v507_v59, %v505_v58  ;;  %v1112_v58 = vmov 28  }
 0x6d3   :  { %990 = vset.pattern.permute.xlu2 %v1112_v58 }
 0x6d4   :  { %v510_v63 = vsel %vm509_vm13, %v508_v62, %v489_v42 }
 0x6d5   :  { %v523_v1 = vpop.xlane.xlu1 %522 }
 0x6d6   :  { %v526_v2 = vcvt.f32.s32 %v523_v1 }
 0x6d8   :  { %v529_v4 = vadd.s32 %v528_v0, %v526_v2 }
 0x6da   :  { %v531_v5 = vsel %vm530_vm14, %v529_v4, %v510_v63 }
 0x6ed   :  { %v534_v15 = vpop.permute.xlu1 %533 }
 0x6ee   :  { %vm535_vm3 = vcmp.eq.s32.totalorder %v1147_v3, %v534_v15 }
 0x6ef   :  { %vm536_vm4 = vmor %vm1357_vm12, %vm535_vm3  ;;  %v537_v18 = vsel %vm535_vm3, %v1376_v17, 0  ;;  %vm614_vm12 = vcmp.eq.s32.totalorder %v1147_v3, 26 }
 0x6f0   :  { %v538_v19 = vsel %vm54_vm2, %v537_v18, 0  ;;  %vm557_vm5 = vmor %vm536_vm4, %vm556_vm0  ;;  %v1113_v18 = vmov 29  }
 0x6f1   :  { %vm1382_vm6 = vmor %vm557_vm5, %vm577_vm15  ;;  %v540_v21 = vshrl.u32 %v538_v19, 16  ;;  %v539_v22 = vand.u32 65535, %v538_v19  ;;  %v1114_v19 = vmov 30   ;;  %vm635_vm15 = vcmp.eq.s32.totalorder %v1147_v3, 27 }
 0x6f3   :  { %v542_v23 = vcvt.s32.f32 %v540_v21  ;;  %v541_v24 = vcvt.s32.f32 %v539_v22 }
 0x6f5   :  { %545 = vadd.xlane.f32.xlu1 %v542_v23  ;;  %543 = vadd.xlane.f32.xlu0 %v541_v24 }
 0x6fd   :  { %564 = vadd.xlane.f32.xlu0 %v562_v26 }
 0x705   :  { %566 = vadd.xlane.f32.xlu0 %v563_v28 }
 0x70d   :  { %585 = vadd.xlane.f32.xlu0 %v583_v30 }
 0x70e   :  { %596 = vperm.xlu1 %988, %v1156_v8   ;;  %v588_v55 = vpop.xlane.xlu2 %587 }
 0x70f   :  { %v590_v57 = vcvt.f32.s32 %v588_v55 }
 0x711   :  { %v591_v59 = vshll.u32 %v590_v57, 16 }
 0x716   :  { %992 = vset.pattern.permute.xlu1 %v1114_v19 }
 0x768   :  { %v546_v31 = vpop.xlane.xlu1 %545  ;;  %v544_v32 = vpop.xlane.xlu0 %543 }
 0x769   :  { %v548_v33 = vcvt.f32.s32 %v546_v31  ;;  %v547_v35 = vcvt.f32.s32 %v544_v32 }
 0x76b   :  { %v549_v34 = vshll.u32 %v548_v33, 16 }
 0x76d   :  { %v550_v36 = vadd.s32 %v549_v34, %v547_v35 }
 0x76f   :  { %v552_v37 = vsel %vm551_vm7, %v550_v36, %v531_v5  ;;  %vm677_vm7 = vcmp.eq.s32.totalorder %v1147_v3, 29 }
 0x770   :  { %v565_v39 = vpop.xlane.xlu0 %564 }
 0x771   :  { %v568_v42 = vcvt.f32.s32 %v565_v39 }
 0x778   :  { %v567_v41 = vpop.xlane.xlu0 %566 }
 0x779   :  { %v569_v38 = vcvt.f32.s32 %v567_v41 }
 0x77b   :  { %v570_v43 = vshll.u32 %v569_v38, 16 }
 0x77d   :  { %v571_v44 = vadd.s32 %v570_v43, %v568_v42 }
 0x77f   :  { %v573_v45 = vsel %vm572_vm8, %v571_v44, %v552_v37 }
 0x780   :  { %v597_v46 = vpop.permute.xlu1 %596  ;;  %v586_v54 = vpop.xlane.xlu0 %585 }
 0x781   :  { %vm598_vm9 = vcmp.eq.s32.totalorder %v1147_v3, %v597_v46  ;;  %v589_v60 = vcvt.f32.s32 %v586_v54 }
 0x782   :  { %vm1393_vm10 = vmor %vm1382_vm6, %vm598_vm9  ;;  %v600_v48 = vsel %vm598_vm9, %v1376_v17, 0  ;;  %vm656_vm6 = vcmp.eq.s32.totalorder %v1147_v3, 28 }
 0x783   :  { %v601_v49 = vsel %vm54_vm2, %v600_v48, 0  ;;  %v592_v63 = vadd.s32 %v591_v59, %v589_v60 }
 0x784   :  { %v602_v50 = vand.u32 65535, %v601_v49  ;;  %v603_v52 = vshrl.u32 %v601_v49, 16 }
 0x785   :  { %v594_v4 = vsel %vm593_vm11, %v592_v63, %v573_v45 }
 0x786   :  { %v604_v51 = vcvt.s32.f32 %v602_v50  ;;  %v605_v53 = vcvt.s32.f32 %v603_v52 }
 0x788   :  { %606 = vadd.xlane.f32.xlu0 %v604_v51  ;;  %v1115_v51 = vmov 31  }
 0x790   :  { %608 = vadd.xlane.f32.xlu0 %v605_v53 }
 0x7a4   :  { %617 = vperm.xlu0 %989, %v1156_v8  }
 0x7ac   :  { %993 = vset.pattern.permute.xlu0 %v1115_v51 }
 0x7fb   :  { %v607_v56 = vpop.xlane.xlu0 %606 }
 0x7fc   :  { %v610_v0 = vcvt.f32.s32 %v607_v56 }
 0x803   :  { %v609_v61 = vpop.xlane.xlu0 %608 }
 0x804   :  { %v611_v62 = vcvt.f32.s32 %v609_v61 }
 0x806   :  { %v612_v1 = vshll.u32 %v611_v62, 16 }
 0x808   :  { %v613_v2 = vadd.s32 %v612_v1, %v610_v0 }
 0x80a   :  { %v615_v5 = vsel %vm614_vm12, %v613_v2, %v594_v4 }
 0x816   :  { %v618_v7 = vpop.permute.xlu0 %617 }
 0x817   :  { %vm619_vm13 = vcmp.eq.s32.totalorder %v1147_v3, %v618_v7  ;;  %v1116_v7 = vmov 32  }
 0x818   :  { %vm1405_vm14 = vmor %vm1393_vm10, %vm619_vm13  ;;  %v621_v10 = vsel %vm619_vm13, %v1376_v17, 0  ;;  %vm698_vm10 = vcmp.eq.s32.totalorder %v1147_v3, 30  ;;  %vm719_vm13 = vcmp.eq.s32.totalorder %v1147_v3, 31 }
 0x819   :  { %v622_v11 = vsel %vm54_vm2, %v621_v10, 0 }
 0x81a   :  { %v624_v12 = vshrl.u32 %v622_v11, 16  ;;  %v623_v14 = vand.u32 65535, %v622_v11 }
 0x81c   :  { %v626_v15 = vcvt.s32.f32 %v624_v12  ;;  %v625_v16 = vcvt.s32.f32 %v623_v14 }
 0x81e   :  { %629 = vadd.xlane.f32.xlu2 %v626_v15  ;;  %627 = vadd.xlane.f32.xlu1 %v625_v16 }
 0x836   :  { %638 = vperm.xlu2 %990, %v1156_v8  }
 0x83e   :  { %991 = vset.pattern.permute.xlu2 %v1113_v18 }
 0x83f   :  { %659 = vperm.xlu2 %991, %v1156_v8  }
 0x847   :  { %994 = vset.pattern.permute.xlu2 %v1116_v7 }
 0x891   :  { %v630_v20 = vpop.xlane.xlu2 %629  ;;  %v628_v21 = vpop.xlane.xlu1 %627 }
 0x892   :  { %v632_v22 = vcvt.f32.s32 %v630_v20  ;;  %v631_v23 = vcvt.f32.s32 %v628_v21  ;;  %v1117_v21 = vmov 33  }
 0x894   :  { %v633_v13 = vshll.u32 %v632_v22, 16  ;;  %v1118_v22 = vmov 34  }
 0x896   :  { %v634_v24 = vadd.s32 %v633_v13, %v631_v23 }
 0x898   :  { %v636_v25 = vsel %vm635_vm15, %v634_v24, %v615_v5 }
 0x899   :  { %v639_v26 = vpop.permute.xlu2 %638 }
 0x89a   :  { %vm640_vm0 = vcmp.eq.s32.totalorder %v1147_v3, %v639_v26 }
 0x89b   :  { %vm641_vm3 = vmor %vm1405_vm14, %vm640_vm0  ;;  %v642_v27 = vsel %vm640_vm0, %v1376_v17, 0  ;;  %vm740_vm0 = vcmp.eq.s32.totalorder %v1147_v3, 32 }
 0x89c   :  { %v643_v28 = vsel %vm54_vm2, %v642_v27, 0 }
 0x89d   :  { %v644_v29 = vand.u32 65535, %v643_v28  ;;  %v645_v30 = vshrl.u32 %v643_v28, 16 }
 0x89f   :  { %v646_v31 = vcvt.s32.f32 %v644_v29  ;;  %v647_v32 = vcvt.s32.f32 %v645_v30 }
 0x8a1   :  { %648 = vadd.xlane.f32.xlu0 %v646_v31  ;;  %v660_v33 = vpop.permute.xlu2 %659  ;;  %650 = vadd.xlane.f32.xlu1 %v647_v32 }
 0x8a2   :  { %vm661_vm4 = vcmp.eq.s32.totalorder %v1147_v3, %v660_v33 }
 0x8a3   :  { %vm1420_vm5 = vmor %vm641_vm3, %vm661_vm4  ;;  %v663_v35 = vsel %vm661_vm4, %v1376_v17, 0 }
 0x8a4   :  { %v664_v36 = vsel %vm54_vm2, %v663_v35, 0 }
 0x8a5   :  { %v666_v37 = vshrl.u32 %v664_v36, 16  ;;  %v665_v39 = vand.u32 65535, %v664_v36 }
 0x8a7   :  { %v668_v40 = vcvt.s32.f32 %v666_v37  ;;  %v667_v41 = vcvt.s32.f32 %v665_v39 }
 0x8a9   :  { %671 = vadd.xlane.f32.xlu2 %v668_v40  ;;  %669 = vadd.xlane.f32.xlu1 %v667_v41 }
 0x8c2   :  { %680 = vperm.xlu1 %992, %v1156_v8  }
 0x8ca   :  { %995 = vset.pattern.permute.xlu1 %v1117_v21 }
 0x914   :  { %v649_v42 = vpop.xlane.xlu0 %648  ;;  %v651_v38 = vpop.xlane.xlu1 %650 }
 0x915   :  { %v653_v43 = vcvt.f32.s32 %v651_v38  ;;  %v652_v44 = vcvt.f32.s32 %v649_v42 }
 0x917   :  { %v654_v45 = vshll.u32 %v653_v43, 16 }
 0x919   :  { %v655_v46 = vadd.s32 %v654_v45, %v652_v44  ;;  %v1119_v44 = vmov 36   ;;  %v1120_v45 = vmov 35  }
 0x91b   :  { %v657_v47 = vsel %vm656_vm6, %v655_v46, %v636_v25 }
 0x91c   :  { %v672_v48 = vpop.xlane.xlu2 %671  ;;  %v670_v49 = vpop.xlane.xlu1 %669 }
 0x91d   :  { %v674_v50 = vcvt.f32.s32 %v672_v48  ;;  %v673_v53 = vcvt.f32.s32 %v670_v49 }
 0x91f   :  { %v675_v52 = vshll.u32 %v674_v50, 16 }
 0x921   :  { %v676_v54 = vadd.s32 %v675_v52, %v673_v53 }
 0x923   :  { %v678_v55 = vsel %vm677_vm7, %v676_v54, %v657_v47 }
 0x934   :  { %v681_v56 = vpop.permute.xlu1 %680 }
 0x935   :  { %vm682_vm8 = vcmp.eq.s32.totalorder %v1147_v3, %v681_v56 }
 0x936   :  { %vm1432_vm9 = vmor %vm1420_vm5, %vm682_vm8  ;;  %v684_v58 = vsel %vm682_vm8, %v1376_v17, 0  ;;  %vm761_vm8 = vcmp.eq.s32.totalorder %v1147_v3, 33 }
 0x937   :  { %v685_v59 = vsel %vm54_vm2, %v684_v58, 0 }
 0x938   :  { %v687_v60 = vshrl.u32 %v685_v59, 16  ;;  %v686_v61 = vand.u32 65535, %v685_v59 }
 0x93a   :  { %v689_v62 = vcvt.s32.f32 %v687_v60  ;;  %v688_v63 = vcvt.s32.f32 %v686_v61 }
 0x93c   :  { %692 = vadd.xlane.f32.xlu1 %v689_v62  ;;  %690 = vadd.xlane.f32.xlu0 %v688_v63 }
 0x950   :  { %701 = vperm.xlu0 %993, %v1156_v8  }
 0x958   :  { %996 = vset.pattern.permute.xlu0 %v1118_v22 }
 0x9af   :  { %v693_v0 = vpop.xlane.xlu1 %692  ;;  %v691_v1 = vpop.xlane.xlu0 %690 }
 0x9b0   :  { %v695_v2 = vcvt.f32.s32 %v693_v0  ;;  %v694_v5 = vcvt.f32.s32 %v691_v1  ;;  %v1121_v1 = vmov 38  }
 0x9b2   :  { %v696_v4 = vshll.u32 %v695_v2, 16 }
 0x9b4   :  { %v697_v9 = vadd.s32 %v696_v4, %v694_v5 }
 0x9b6   :  { %v699_v10 = vsel %vm698_vm10, %v697_v9, %v678_v55 }
 0x9c2   :  { %v702_v11 = vpop.permute.xlu0 %701 }
 0x9c3   :  { %vm703_vm11 = vcmp.eq.s32.totalorder %v1147_v3, %v702_v11 }
 0x9c4   :  { %vm1443_vm12 = vmor %vm1432_vm9, %vm703_vm11  ;;  %v705_v14 = vsel %vm703_vm11, %v1376_v17, 0  ;;  %vm782_vm9 = vcmp.eq.s32.totalorder %v1147_v3, 34 }
 0x9c5   :  { %v706_v15 = vsel %vm54_vm2, %v705_v14, 0 }
 0x9c6   :  { %v707_v16 = vand.u32 65535, %v706_v15  ;;  %v708_v19 = vshrl.u32 %v706_v15, 16 }
 0x9c8   :  { %v709_v18 = vcvt.s32.f32 %v707_v16  ;;  %v710_v20 = vcvt.s32.f32 %v708_v19  ;;  %v1123_v19 = vmov 37  }
 0x9ca   :  { %711 = vadd.xlane.f32.xlu2 %v709_v18  ;;  %v1122_v18 = vmov 39  }
 0x9d2   :  { %713 = vadd.xlane.f32.xlu2 %v710_v20 }
 0x9ea   :  { %722 = vperm.xlu2 %994, %v1156_v8  }
 0x9f2   :  { %997 = vset.pattern.permute.xlu2 %v1120_v45 }
 0xa3d   :  { %v712_v13 = vpop.xlane.xlu2 %711 }
 0xa3e   :  { %v715_v25 = vcvt.f32.s32 %v712_v13 }
 0xa45   :  { %v714_v23 = vpop.xlane.xlu2 %713 }
 0xa46   :  { %v716_v24 = vcvt.f32.s32 %v714_v23 }
 0xa48   :  { %v717_v26 = vshll.u32 %v716_v24, 16 }
 0xa4a   :  { %v718_v27 = vadd.s32 %v717_v26, %v715_v25 }
 0xa4c   :  { %v720_v28 = vsel %vm719_vm13, %v718_v27, %v699_v10 }
 0xa4d   :  { %v723_v29 = vpop.permute.xlu2 %722 }
 0xa4e   :  { %vm724_vm14 = vcmp.eq.s32.totalorder %v1147_v3, %v723_v29 }
 0xa4f   :  { %vm1454_vm15 = vmor %vm1443_vm12, %vm724_vm14  ;;  %v726_v31 = vsel %vm724_vm14, %v1376_v17, 0 }
 0xa50   :  { %v727_v32 = vsel %vm54_vm2, %v726_v31, 0 }
 0xa51   :  { %v729_v33 = vshrl.u32 %v727_v32, 16  ;;  %v728_v34 = vand.u32 65535, %v727_v32 }
 0xa53   :  { %v731_v35 = vcvt.s32.f32 %v729_v33  ;;  %v730_v36 = vcvt.s32.f32 %v728_v34 }
 0xa55   :  { %734 = vadd.xlane.f32.xlu0 %v731_v35  ;;  %732 = vadd.xlane.f32.xlu1 %v730_v36 }
 0xa69   :  { %764 = vperm.xlu0 %996, %v1156_v8  }
 0xa6e   :  { %743 = vperm.xlu1 %995, %v1156_v8  }
 0xa71   :  { %998 = vset.pattern.permute.xlu0 %v1119_v44 }
 0xa72   :  { %806 = vperm.xlu0 %998, %v1156_v8  }
 0xa76   :  { %999 = vset.pattern.permute.xlu1 %v1123_v19 }
 0xa7a   :  { %1000 = vset.pattern.permute.xlu0 %v1121_v1 }
 0xa7b   :  { %848 = vperm.xlu0 %1000, %v1156_v8  }
 0xa83   :  { %1001 = vset.pattern.permute.xlu0 %v1122_v18 }
 0xa84   :  { %869 = vperm.xlu0 %1001, %v1156_v8  }
 0xac8   :  { %v735_v37 = vpop.xlane.xlu0 %734  ;;  %v733_v39 = vpop.xlane.xlu1 %732 }
 0xac9   :  { %v737_v40 = vcvt.f32.s32 %v735_v37  ;;  %v736_v42 = vcvt.f32.s32 %v733_v39 }
 0xacb   :  { %v738_v41 = vshll.u32 %v737_v40, 16 }
 0xacd   :  { %v739_v38 = vadd.s32 %v738_v41, %v736_v42 }
 0xacf   :  { %v741_v43 = vsel %vm740_vm0, %v739_v38, %v720_v28  ;;  %vm824_vm0 = vcmp.eq.s32.totalorder %v1147_v3, 36 }
 0xadb   :  { %v765_v46 = vpop.permute.xlu0 %764 }
 0xadc   :  { %vm766_vm3 = vcmp.eq.s32.totalorder %v1147_v3, %v765_v46 }
 0xadd   :  { %v768_v49 = vsel %vm766_vm3, %v1376_v17, 0 }
 0xade   :  { %v769_v54 = vsel %vm54_vm2, %v768_v49, 0 }
 0xadf   :  { %v770_v57 = vand.u32 65535, %v769_v54  ;;  %v771_v59 = vshrl.u32 %v769_v54, 16 }
 0xae0   :  { %v744_v47 = vpop.permute.xlu1 %743 }
 0xae1   :  { %vm745_vm4 = vcmp.eq.s32.totalorder %v1147_v3, %v744_v47  ;;  %v772_v58 = vcvt.s32.f32 %v770_v57  ;;  %v773_v60 = vcvt.s32.f32 %v771_v59 }
 0xae2   :  { %vm746_vm5 = vmor %vm1454_vm15, %vm745_vm4  ;;  %v747_v48 = vsel %vm745_vm4, %v1376_v17, 0  ;;  %vm803_vm15 = vcmp.eq.s32.totalorder %v1147_v3, 35 }
 0xae3   :  { %v748_v50 = vsel %vm54_vm2, %v747_v48, 0  ;;  %vm1471_vm6 = vmor %vm746_vm5, %vm766_vm3 }
 0xae4   :  { %v750_v52 = vshrl.u32 %v748_v50, 16  ;;  %v749_v53 = vand.u32 65535, %v748_v50  ;;  %v807_v61 = vpop.permute.xlu0 %806 }
 0xae5   :  { %vm808_vm7 = vcmp.eq.s32.totalorder %v1147_v3, %v807_v61 }
 0xae6   :  { %v752_v55 = vcvt.s32.f32 %v750_v52  ;;  %v751_v56 = vcvt.s32.f32 %v749_v53  ;;  %v810_v2 = vsel %vm808_vm7, %v1376_v17, 0 }
 0xae7   :  { %v811_v9 = vsel %vm54_vm2, %v810_v2, 0 }
 0xae8   :  { %755 = vadd.xlane.f32.xlu1 %v752_v55  ;;  %753 = vadd.xlane.f32.xlu2 %v751_v56  ;;  %v813_v12 = vshrl.u32 %v811_v9, 16  ;;  %v812_v31 = vand.u32 65535, %v811_v9 }
 0xaea   :  { %v815_v14 = vcvt.s32.f32 %v813_v12  ;;  %v814_v32 = vcvt.s32.f32 %v812_v31 }
 0xaed   :  { %v849_v33 = vpop.permute.xlu0 %848 }
 0xaee   :  { %vm850_vm13 = vcmp.eq.s32.totalorder %v1147_v3, %v849_v33 }
 0xaef   :  { %v852_v34 = vsel %vm850_vm13, %v1376_v17, 0 }
 0xaf0   :  { %774 = vadd.xlane.f32.xlu2 %v772_v58  ;;  %v853_v35 = vsel %vm54_vm2, %v852_v34, 0 }
 0xaf1   :  { %v854_v36 = vand.u32 65535, %v853_v35  ;;  %v855_v39 = vshrl.u32 %v853_v35, 16 }
 0xaf3   :  { %v856_v37 = vcvt.s32.f32 %v854_v36  ;;  %v857_v40 = vcvt.s32.f32 %v855_v39 }
 0xaf6   :  { %v870_v41 = vpop.permute.xlu0 %869 }
 0xaf7   :  { %vm871_vm14 = vcmp.eq.s32.totalorder %v1147_v3, %v870_v41 }
 0xaf8   :  { %776 = vadd.xlane.f32.xlu2 %v773_v60  ;;  %v1003_v60 = vld [vmem:[#allocation5] sm:$0x3] }
 0xaf9   :  { %v890_v61 = vsel %vm44_vm1, %v1003_v60, 0  ;;  %vm845_vm1 = vcmp.eq.s32.totalorder %v1147_v3, 37 }
 0xb10   :  { %785 = vperm.xlu2 %997, %v1156_v8  }
 0xb39   :  { %818 = vadd.xlane.f32.xlu2 %v815_v14 }
 0xb41   :  { %858 = vadd.xlane.f32.xlu2 %v856_v37 }
 0xb49   :  { %860 = vadd.xlane.f32.xlu2 %v857_v40 }
 0xb5b   :  { %v756_v62 = vpop.xlane.xlu1 %755  ;;  %v754_v63 = vpop.xlane.xlu2 %753 }
 0xb5c   :  { %v758_v0 = vcvt.f32.s32 %v756_v62  ;;  %v757_v5 = vcvt.f32.s32 %v754_v63 }
 0xb5e   :  { %v759_v4 = vshll.u32 %v758_v0, 16 }
 0xb60   :  { %v760_v7 = vadd.s32 %v759_v4, %v757_v5 }
 0xb62   :  { %v762_v10 = vsel %vm761_vm8, %v760_v7, %v741_v43  ;;  %vm887_vm8 = vcmp.eq.s32.totalorder %v1147_v3, 39 }
 0xb63   :  { %v775_v11 = vpop.xlane.xlu2 %774 }
 0xb64   :  { %v778_v20 = vcvt.f32.s32 %v775_v11 }
 0xb6b   :  { %v777_v15 = vpop.xlane.xlu2 %776 }
 0xb6c   :  { %v779_v16 = vcvt.f32.s32 %v777_v15 }
 0xb6e   :  { %v780_v21 = vshll.u32 %v779_v16, 16 }
 0xb70   :  { %v781_v22 = vadd.s32 %v780_v21, %v778_v20 }
 0xb72   :  { %v783_v13 = vsel %vm782_vm9, %v781_v22, %v762_v10  ;;  %vm893_vm9 = vcmask 326656  }
 0xb73   :  { %v786_v23 = vpop.permute.xlu2 %785 }
 0xb74   :  { %vm787_vm10 = vcmp.eq.s32.totalorder %v1147_v3, %v786_v23 }
 0xb75   :  { %vm788_vm11 = vmor %vm1471_vm6, %vm787_vm10  ;;  %v789_v24 = vsel %vm787_vm10, %v1376_v17, 0  ;;  %vm895_vm10 = vcmask 654336  }
 0xb76   :  { %v790_v25 = vsel %vm54_vm2, %v789_v24, 0  ;;  %vm1493_vm12 = vmor %vm788_vm11, %vm808_vm7  ;;  %vm866_vm7 = vcmp.eq.s32.totalorder %v1147_v3, 38 }
 0xb77   :  { %v791_v27 = vand.u32 65535, %v790_v25  ;;  %v792_v29 = vshrl.u32 %v790_v25, 16 }
 0xb79   :  { %v793_v28 = vcvt.s32.f32 %v791_v27  ;;  %v794_v30 = vcvt.s32.f32 %v792_v29 }
 0xb7b   :  { %795 = vadd.xlane.f32.xlu1 %v793_v28 }
 0xb83   :  { %797 = vadd.xlane.f32.xlu1 %v794_v30 }
 0xb8b   :  { %816 = vadd.xlane.f32.xlu1 %v814_v32 }
 0xba4   :  { %827 = vperm.xlu1 %999, %v1156_v8   ;;  %v873_v8 = vsel %vm871_vm14, %v1376_v17, 0 }
 0xba5   :  { %v874_v42 = vsel %vm54_vm2, %v873_v8, 0 }
 0xba6   :  { %v876_v38 = vshrl.u32 %v874_v42, 16  ;;  %v875_v45 = vand.u32 65535, %v874_v42 }
 0xba8   :  { %v878_v43 = vcvt.s32.f32 %v876_v38  ;;  %v877_v46 = vcvt.s32.f32 %v875_v45 }
 0xbaa   :  { %881 = vadd.xlane.f32.xlu2 %v878_v43 }
 0xbac   :  { %v819_v48 = vpop.xlane.xlu2 %818 }
 0xbad   :  { %v821_v52 = vcvt.f32.s32 %v819_v48 }
 0xbaf   :  { %v822_v55 = vshll.u32 %v821_v52, 16 }
 0xbb2   :  { %879 = vadd.xlane.f32.xlu2 %v877_v46 }
 0xbb4   :  { %v859_v7 = vpop.xlane.xlu2 %858 }
 0xbb5   :  { %v862_v19 = vcvt.f32.s32 %v859_v7 }
 0xbbc   :  { %v861_v9 = vpop.xlane.xlu2 %860 }
 0xbbd   :  { %v863_v11 = vcvt.f32.s32 %v861_v9 }
 0xbbf   :  { %v864_v20 = vshll.u32 %v863_v11, 16 }
 0xbc1   :  { %v865_v25 = vadd.s32 %v864_v20, %v862_v19 }
 0xbca   :  { %891 = vrot.lane.b32.xlu2 %v890_v61, %s1124_s0 }
 0xbee   :  { %v796_v44 = vpop.xlane.xlu1 %795 }
 0xbef   :  { %v799_v50 = vcvt.f32.s32 %v796_v44 }
 0xbf6   :  { %v798_v47 = vpop.xlane.xlu1 %797 }
 0xbf7   :  { %v800_v49 = vcvt.f32.s32 %v798_v47 }
 0xbf9   :  { %v801_v51 = vshll.u32 %v800_v49, 16 }
 0xbfb   :  { %v802_v53 = vadd.s32 %v801_v51, %v799_v50 }
 0xbfd   :  { %v804_v54 = vsel %vm803_vm15, %v802_v53, %v783_v13 }
 0xbfe   :  { %v817_v56 = vpop.xlane.xlu1 %816 }
 0xbff   :  { %v820_v57 = vcvt.f32.s32 %v817_v56 }
 0xc01   :  { %v823_v58 = vadd.s32 %v822_v55, %v820_v57 }
 0xc03   :  { %v825_v59 = vsel %vm824_vm0, %v823_v58, %v804_v54 }
 0xc16   :  { %v828_v62 = vpop.permute.xlu1 %827 }
 0xc17   :  { %vm829_vm3 = vcmp.eq.s32.totalorder %v1147_v3, %v828_v62 }
 0xc18   :  { %vm830_vm4 = vmor %vm1493_vm12, %vm829_vm3  ;;  %v831_v63 = vsel %vm829_vm3, %v1376_v17, 0 }
 0xc19   :  { %v832_v0 = vsel %vm54_vm2, %v831_v63, 0  ;;  %vm851_vm5 = vmor %vm830_vm4, %vm850_vm13 }
 0xc1a   :  { %vm1521_vm6 = vmor %vm851_vm5, %vm871_vm14  ;;  %v834_v1 = vshrl.u32 %v832_v0, 16  ;;  %v833_v2 = vand.u32 65535, %v832_v0 }
 0xc1b   :  { %v889_v3 = vsel %vm1521_vm6, 50264, %v1376_v17 }
 0xc1c   :  { %v836_v4 = vcvt.s32.f32 %v834_v1  ;;  %v835_v5 = vcvt.s32.f32 %v833_v2 }
 0xc1d   :  { %v882_v10 = vpop.xlane.xlu2 %881 }
 0xc1e   :  { %839 = vadd.xlane.f32.xlu0 %v836_v4  ;;  %837 = vadd.xlane.f32.xlu1 %v835_v5  ;;  %v884_v12 = vcvt.f32.s32 %v882_v10 }
 0xc20   :  { %v885_v21 = vshll.u32 %v884_v12, 16 }
 0xc25   :  { %v880_v14 = vpop.xlane.xlu2 %879 }
 0xc26   :  { %v883_v22 = vcvt.f32.s32 %v880_v14 }
 0xc28   :  { %v886_v26 = vadd.s32 %v885_v21, %v883_v22 }
 0xc2d   :  { %v892_v28 = vpop.permute.xlu2 %891 }
 0xc91   :  { %v840_v15 = vpop.xlane.xlu0 %839  ;;  %v838_v16 = vpop.xlane.xlu1 %837 }
 0xc92   :  { %v842_v18 = vcvt.f32.s32 %v840_v15  ;;  %v841_v23 = vcvt.f32.s32 %v838_v16 }
 0xc94   :  { %v843_v13 = vshll.u32 %v842_v18, 16 }
 0xc96   :  { %v844_v24 = vadd.s32 %v843_v13, %v841_v23 }
 0xc98   :  { %v846_v27 = vsel %vm845_vm1, %v844_v24, %v825_v59 }
 0xc99   :  { %v867_v29 = vsel %vm866_vm7, %v865_v25, %v846_v27 }
 0xc9a   :  { %v888_v30 = vsel %vm887_vm8, %v886_v26, %v867_v29 }
 0xc9b   :  { %v894_v31 = vsel %vm893_vm9, %v888_v30, %v892_v28 }
 0xc9c   :  { %v896_v32 = vsel %vm895_vm10, %v894_v31, 0 }
 0xc9d   :  { %v897_v33 = vrot.slane %v896_v32, 6 }
 0xc9f   :  { %v898_v34 = vsel %vm54_vm2, %v889_v3, %v897_v33 }
 0xca0   :  { %899 = vst [vmem:[#allocation7] sm:$0xf] %v898_v34 }
 0xca1   :  { %910 = dma.vmem_to_hbm [thread:$0]  %s906_s19, 64, %s908_s22, [#allocation4]  }
 0xca2   :  { %1080 = dma.done.wait [#allocation4], 64  }
 0xca3   :  { %1081 = vsyncadd [#allocation4], 4294967232 }
 0xca4   :  { %915 = vsyncpa [#allocation3], 1 }
 0xca5   :  { %916 = vsyncpa [#allocation6], 1 }
 0xca6   :  { %917 = vsyncpa [#allocation4], 1 }

</bundles_post_ra>
